<compile_context>
chip_gen: v5e
topology: v5e:2x2
jax: 0.10.0
libtpu: 0.0.40
codegen_flags: <defaults>
</compile_context>

<pallas_src>
import jax
import jax.numpy as jnp
from jax.experimental import pallas as pl
from jax.experimental.pallas import tpu as pltpu


# ---------------------------------------------------------------------------
# Kernel
# ---------------------------------------------------------------------------
def gl_kernel(x_ref, xt_ref, xb_ref, w_ref, b_ref, o_ref, xpad_ref):
    """One (c-block, batch-block, h-tile) step of: out = x + dwconv3x3(x).

    x_ref   : (Bb, Th, W, Cb)      interior rows of the tile (input dtype)
    xt_ref  : (Bb, 1,  W, Cb)      image row just above the tile (clamped)
    xb_ref  : (Bb, 1,  W, Cb)      image row just below the tile (clamped)
    w_ref   : (3, 3, Cb)  f32      per-channel taps, centre tap has +1 folded in
    b_ref   : (1, Cb)     f32      per-channel bias
    o_ref   : (Bb, Th, W, Cb)      output tile
    xpad_ref: (Bb, Th+2, W+2, Cb)  f32 scratch: zero-padded tile
    """
    Bb, Th, W, Cb = x_ref.shape
    hi = pl.program_id(2)
    n_h = pl.num_programs(2)
    f32 = jnp.float32

    # --- stage the padded tile in VMEM ------------------------------------
    # Zero only the two W-halo column strips (cheap); the H-halo rows come
    # from the neighbour-row inputs, or zeros at the image top/bottom.  Every
    # scratch byte that is read is written in this same step, so there is no
    # cross-step scratch state and all grid axes can be "parallel".
    zcol = jnp.zeros((Bb, Th + 2, 1, Cb), dtype=f32)
    xpad_ref[:, :, 0:1, :] = zcol
    xpad_ref[:, :, W + 1:W + 2, :] = zcol
    xpad_ref[:, pl.ds(1, Th), pl.ds(1, W), :] = x_ref[...].astype(f32)
    top = jnp.where(hi == 0, 0.0, xt_ref[...].astype(f32))
    bot = jnp.where(hi == n_h - 1, 0.0, xb_ref[...].astype(f32))
    xpad_ref[:, 0:1, pl.ds(1, W), :] = top
    xpad_ref[:, Th + 1:Th + 2, pl.ds(1, W), :] = bot

    # --- 9 shifted VPU MACs, f32 accumulation ------------------------------
    # Residual is already folded into the centre tap; bias broadcast hoisted
    # once outside the tap loop.
    w = w_ref[...]                                                 # (3, 3, Cb)
    acc = jnp.broadcast_to(b_ref[...].reshape(1, 1, 1, Cb), (Bb, Th, W, Cb))
    for kh in range(3):
        for kw in range(3):
            tap = w[kh, kw, :].reshape(1, 1, 1, Cb)
            acc = acc + tap * xpad_ref[:, pl.ds(kh, Th), pl.ds(kw, W), :]

    o_ref[...] = acc.astype(o_ref.dtype)


# ---------------------------------------------------------------------------
# Tiling heuristics
# ---------------------------------------------------------------------------
_LANE = 128
_SUBLANE = 8
_BLOCK_BUDGET = 16 << 20       # target per-step VMEM working set (bytes)
_MIN_STEP_IN_BYTES = 1 << 20   # aim for >= 1 MiB of input per grid step


def _divisors(n):
    return [d for d in range(1, n + 1) if n % d == 0]


def _rup(x, m):
    return -(-x // m) * m


def _tile_bytes(shape, itemsize):
    """Bytes of a VMEM tile padded to the (8, 128) layout."""
    dims = list(shape)
    dims[-1] = _rup(dims[-1], _LANE)
    if len(dims) >= 2:
        dims[-2] = _rup(dims[-2], _SUBLANE)
    n = 1
    for d in dims:
        n *= d
    return n * itemsize


def _step_vmem_bytes(b_blk, th, W, c_blk, in_isz, out_isz):
    """Per-grid-step VMEM footprint (double-buffered blocks + f32 scratch)."""
    main_in = _tile_bytes((b_blk, th, W, c_blk), in_isz)
    halo_in = 2 * _tile_bytes((b_blk, 1, W, c_blk), in_isz)
    out = _tile_bytes((b_blk, th, W, c_blk), out_isz)
    scratch = _tile_bytes((b_blk, th + 2, W + 2, c_blk), 4)
    return 2 * (main_in + halo_in + out) + scratch


def _choose_tiling(B, C, H, W, in_isz, out_isz, tile_h_override):
    # Channel block: keep output stores lane-dense when C allows it.
    if C % _LANE == 0:
        c_blk = _LANE
    else:
        c_blk = C
        # TODO(synk): for large C that is not a multiple of 128, pad C up to a
        # multiple of 128 in the wrapper to keep stores fully lane-dense.

    # H tile: largest divisor of H whose footprint fits the VMEM budget.
    if tile_h_override is not None:
        assert H % tile_h_override == 0, "tile_h must divide H"
        th = tile_h_override
    else:
        fits = [d for d in _divisors(H)
                if _step_vmem_bytes(1, d, W, c_blk, in_isz, out_isz) <= _BLOCK_BUDGET]
        pref = [d for d in fits if d % _SUBLANE == 0 or d == H]
        th = max(pref or fits or [1])

    # Grow the channel block while per-step traffic is small.
    while (C % (2 * c_blk) == 0
           and th * W * c_blk * in_isz < _MIN_STEP_IN_BYTES
           and _step_vmem_bytes(1, th, W, 2 * c_blk, in_isz, out_isz) <= _BLOCK_BUDGET):
        c_blk *= 2

    # Fold batch elements while per-step traffic is still small.
    b_blk = 1
    for d in _divisors(B):
        if d == 1:
            continue
        if (th * W * c_blk * b_blk * in_isz < _MIN_STEP_IN_BYTES
                and _step_vmem_bytes(d, th, W, c_blk, in_isz, out_isz) <= _BLOCK_BUDGET):
            b_blk = d

    # Guarantee >= 2 grid steps so megacore (v7x) has something to split.
    if (C // c_blk) * (B // b_blk) * (H // th) < 2:
        if B >= 2:
            b_blk = max(d for d in _divisors(B) if B // d >= 2)
        elif tile_h_override is None and th > 1:
            th = max(d for d in _divisors(H) if d < H)

    return c_blk, b_blk, th


# ---------------------------------------------------------------------------
# Forward passes
# ---------------------------------------------------------------------------
def gl_forward_nhwc(x_nhwc, weight, bias, *, tile_h=None):
    """NHWC-native GL forward: x + depthwise_conv3x3(x).

    x_nhwc: (B, H, W, C); weight: (C, 1, 3, 3); bias: (C,)
    """
    B, H, W, C = x_nhwc.shape
    in_isz = jnp.dtype(x_nhwc.dtype).itemsize
    out_isz = in_isz

    # Per-channel taps (3, 3, C) in f32, residual folded into the centre tap:
    # x + conv(x) == conv'(x) + bias with w'[1,1,c] = w[1,1,c] + 1.
    w = jnp.transpose(weight.reshape(C, 3, 3), (1, 2, 0)).astype(jnp.float32)
    w = w.at[1, 1, :].add(1.0)
    b = bias.reshape(1, C).astype(jnp.float32)

    c_blk, b_blk, th = _choose_tiling(B, C, H, W, in_isz, out_isz, tile_h)
    n_c, n_b, n_h = C // c_blk, B // b_blk, H // th
    grid = (n_c, n_b, n_h)

    step_bytes = _step_vmem_bytes(b_blk, th, W, c_blk, in_isz, out_isz)
    vmem_limit = int(max(32 << 20, min(2 * step_bytes + (8 << 20), 64 << 20)))

    # Main tile + two 1-row halo views of the same input (clamped at the image
    # boundary; the kernel replaces clamped rows with zeros).
    x_spec = pl.BlockSpec((b_blk, th, W, c_blk),
                          lambda ci, bi, hi: (bi, hi, 0, ci))
    top_spec = pl.BlockSpec(
        (b_blk, 1, W, c_blk),
        lambda ci, bi, hi: (bi, jnp.maximum(hi * th - 1, 0), 0, ci))
    bot_spec = pl.BlockSpec(
        (b_blk, 1, W, c_blk),
        lambda ci, bi, hi: (bi, jnp.minimum((hi + 1) * th, H - 1), 0, ci))
    w_spec = pl.BlockSpec((3, 3, c_blk), lambda ci, bi, hi: (0, 0, ci))
    b_spec = pl.BlockSpec((1, c_blk), lambda ci, bi, hi: (0, ci))
    o_spec = pl.BlockSpec((b_blk, th, W, c_blk),
                          lambda ci, bi, hi: (bi, hi, 0, ci))

    return pl.pallas_call(
        gl_kernel,
        out_shape=jax.ShapeDtypeStruct((B, H, W, C), x_nhwc.dtype),
        grid_spec=pltpu.PrefetchScalarGridSpec(
            num_scalar_prefetch=0,
            grid=grid,
            in_specs=[x_spec, top_spec, bot_spec, w_spec, b_spec],
            out_specs=o_spec,
            scratch_shapes=[
                pltpu.VMEM((b_blk, th + 2, W + 2, c_blk), jnp.float32)],
        ),
        compiler_params=pltpu.CompilerParams(
            dimension_semantics=("parallel", "parallel", "parallel"),
            vmem_limit_bytes=vmem_limit),
        cost_estimate=pl.CostEstimate(
            flops=19 * B * H * W * C,                 # 9 MACs + bias per elem
            transcendentals=0,
            bytes_accessed=int(B * H * W * C * (in_isz + out_isz)
                               + B * H * W * C * in_isz * 2 // max(th, 1)
                               + 10 * C * 4)),
    )(x_nhwc, x_nhwc, x_nhwc, w, b)


def gl_forward(x, weight, bias, *, tile_h=None):
    """NCHW (PyTorch-layout) adapter around the NHWC-native kernel.

    NOTE: the two transposes here move ~2x the bytes the kernel itself moves.
    An NHWC-resident model should call gl_forward_nhwc directly.
    """
    x_nhwc = jnp.transpose(x, (0, 2, 3, 1))
    out_nhwc = gl_forward_nhwc(x_nhwc, weight, bias, tile_h=tile_h)
    return jnp.transpose(out_nhwc, (0, 3, 1, 2))


def gl_reference(x, weight, bias):
    """Pure-JAX reference: depthwise conv2d (groups=C, padding=1) + residual."""
    C = x.shape[1]
    y = jax.lax.conv_general_dilated(
        x, weight,
        window_strides=(1, 1),
        padding=((1, 1), (1, 1)),
        dimension_numbers=("NCHW", "OIHW", "NCHW"),
        feature_group_count=C,
    ) + bias.reshape(1, C, 1, 1)
    return x + y


# ---------------------------------------------------------------------------
# Self-test
# ---------------------------------------------------------------------------
if __name__ == "__main__":
    key = jax.random.PRNGKey(0)
    k1, k2, k3, k4 = jax.random.split(key, 4)

    # Test 1: module-sized shapes, NCHW interface (matches the PyTorch spec).
    B, C, H, W = 2, 4, 16, 16
    x = jax.random.normal(k1, (B, C, H, W), dtype=jnp.float32)
    weight = jax.random.normal(k2, (C, 1, 3, 3), dtype=jnp.float32) * 0.1
    bias = jax.random.normal(k3, (C,), dtype=jnp.float32) * 0.1

    out = jax.block_until_ready(gl_forward(x, weight, bias))
    ref = gl_reference(x, weight, bias)
    assert out.shape == (B, C, H, W)
    assert jnp.allclose(out, ref, atol=2e-5, rtol=2e-5), "mismatch (test 1)"

    # Test 2: lane-dense channels (C=128) with forced H-tiling so the halo
    # path (top / interior / bottom tiles) is exercised and verified.
    B2, C2, H2, W2 = 1, 128, 32, 16
    ka, kb, kc = jax.random.split(k4, 3)
    x2 = jax.random.normal(ka, (B2, C2, H2, W2), dtype=jnp.float32)
    w2 = jax.random.normal(kb, (C2, 1, 3, 3), dtype=jnp.float32) * 0.1
    b2 = jax.random.normal(kc, (C2,), dtype=jnp.float32) * 0.1

    out2 = jax.block_until_ready(gl_forward(x2, w2, b2, tile_h=8))
    ref2 = gl_reference(x2, w2, b2)
    assert jnp.allclose(out2, ref2, atol=2e-5, rtol=2e-5), "mismatch (test 2)"

    print("KERNEL_OK")
</pallas_src>

<mosaic_0001>
module attributes {stable_mosaic.version = 11 : i64} {
  func.func @gl_kernel(%arg0: i32, %arg1: i32, %arg2: i32, %arg3: memref<1x16x16x4xf32, #tpu.memory_space<vmem>>, %arg4: memref<1x1x16x4xf32, #tpu.memory_space<vmem>>, %arg5: memref<1x1x16x4xf32, #tpu.memory_space<vmem>>, %arg6: memref<3x3x4xf32, #tpu.memory_space<vmem>>, %arg7: memref<1x4xf32, #tpu.memory_space<vmem>>, %arg8: memref<1x16x16x4xf32, #tpu.memory_space<vmem>>, %arg9: memref<1x18x18x4xf32, #tpu.memory_space<vmem>>) attributes {dimension_semantics = [#tpu.dimension_semantics<parallel>, #tpu.dimension_semantics<parallel>, #tpu.dimension_semantics<parallel>], iteration_bounds = array<i64: 1, 2, 1>, scalar_prefetch = 0 : i64, scratch_operands = 1 : i64, tpu.core_type = #tpu.core_type<tc>, window_params = [{transform_indices = @transform_0, window_bounds = array<i64: 1, 16, 16, 4>}, {transform_indices = @transform_1, window_bounds = array<i64: 1, 1, 16, 4>}, {transform_indices = @transform_2, window_bounds = array<i64: 1, 1, 16, 4>}, {transform_indices = @transform_3, window_bounds = array<i64: 3, 3, 4>}, {transform_indices = @transform_4, window_bounds = array<i64: 1, 4>}, {transform_indices = @transform_5, window_bounds = array<i64: 1, 16, 16, 4>}]} {
    %cst = arith.constant 0.000000e+00 : f32
    %0 = vector.broadcast %cst : f32 to vector<1x18x1x4xf32>
    %c0 = arith.constant 0 : index
    %c0_0 = arith.constant 0 : index
    %c0_1 = arith.constant 0 : index
    %c0_2 = arith.constant 0 : index
    %1 = vector.load %arg9[%c0, %c0_0, %c0_1, %c0_2] : memref<1x18x18x4xf32, #tpu.memory_space<vmem>>, vector<1x18x1x4xf32>
    tpu.vector_store %arg9[%c0, %c0_0, %c0_1, %c0_2], %0 {strides = array<i32>} : memref<1x18x18x4xf32, #tpu.memory_space<vmem>>, vector<1x18x1x4xf32>,
    %c0_3 = arith.constant 0 : index
    %c0_4 = arith.constant 0 : index
    %c17 = arith.constant 17 : index
    %c0_5 = arith.constant 0 : index
    %2 = vector.load %arg9[%c0_3, %c0_4, %c17, %c0_5] : memref<1x18x18x4xf32, #tpu.memory_space<vmem>>, vector<1x18x1x4xf32>
    tpu.vector_store %arg9[%c0_3, %c0_4, %c17, %c0_5], %0 {strides = array<i32>} : memref<1x18x18x4xf32, #tpu.memory_space<vmem>>, vector<1x18x1x4xf32>,
    %c0_6 = arith.constant 0 : index
    %c0_7 = arith.constant 0 : index
    %c0_8 = arith.constant 0 : index
    %c0_9 = arith.constant 0 : index
    %3 = vector.load %arg3[%c0_6, %c0_7, %c0_8, %c0_9] : memref<1x16x16x4xf32, #tpu.memory_space<vmem>>, vector<1x16x16x4xf32>
    %c0_10 = arith.constant 0 : index
    %c1 = arith.constant 1 : index
    %c1_11 = arith.constant 1 : index
    %c0_12 = arith.constant 0 : index
    %4 = vector.load %arg9[%c0_10, %c1, %c1_11, %c0_12] : memref<1x18x18x4xf32, #tpu.memory_space<vmem>>, vector<1x16x16x4xf32>
    tpu.vector_store %arg9[%c0_10, %c1, %c1_11, %c0_12], %3 {strides = array<i32>} : memref<1x18x18x4xf32, #tpu.memory_space<vmem>>, vector<1x16x16x4xf32>,
    %c0_i32 = arith.constant 0 : i32
    %5 = arith.cmpi eq, %arg2, %c0_i32 : i32
    %c0_13 = arith.constant 0 : index
    %c0_14 = arith.constant 0 : index
    %c0_15 = arith.constant 0 : index
    %c0_16 = arith.constant 0 : index
    %6 = vector.load %arg4[%c0_13, %c0_14, %c0_15, %c0_16] : memref<1x1x16x4xf32, #tpu.memory_space<vmem>>, vector<1x1x16x4xf32>
    %cst_17 = arith.constant 0.000000e+00 : f32
    %7 = vector.broadcast %cst_17 : f32 to vector<1x1x16x4xf32>
    %8 = arith.select %5, %7, %6 : vector<1x1x16x4xf32>
    %c0_i32_18 = arith.constant 0 : i32
    %9 = arith.cmpi eq, %arg2, %c0_i32_18 : i32
    %c0_19 = arith.constant 0 : index
    %c0_20 = arith.constant 0 : index
    %c0_21 = arith.constant 0 : index
    %c0_22 = arith.constant 0 : index
    %10 = vector.load %arg5[%c0_19, %c0_20, %c0_21, %c0_22] : memref<1x1x16x4xf32, #tpu.memory_space<vmem>>, vector<1x1x16x4xf32>
    %cst_23 = arith.constant 0.000000e+00 : f32
    %11 = vector.broadcast %cst_23 : f32 to vector<1x1x16x4xf32>
    %12 = arith.select %9, %11, %10 : vector<1x1x16x4xf32>
    %c0_24 = arith.constant 0 : index
    %c0_25 = arith.constant 0 : index
    %c1_26 = arith.constant 1 : index
    %c0_27 = arith.constant 0 : index
    %13 = vector.load %arg9[%c0_24, %c0_25, %c1_26, %c0_27] : memref<1x18x18x4xf32, #tpu.memory_space<vmem>>, vector<1x1x16x4xf32>
    tpu.vector_store %arg9[%c0_24, %c0_25, %c1_26, %c0_27], %8 {strides = array<i32>} : memref<1x18x18x4xf32, #tpu.memory_space<vmem>>, vector<1x1x16x4xf32>,
    %c0_28 = arith.constant 0 : index
    %c17_29 = arith.constant 17 : index
    %c1_30 = arith.constant 1 : index
    %c0_31 = arith.constant 0 : index
    %14 = vector.load %arg9[%c0_28, %c17_29, %c1_30, %c0_31] : memref<1x18x18x4xf32, #tpu.memory_space<vmem>>, vector<1x1x16x4xf32>
    tpu.vector_store %arg9[%c0_28, %c17_29, %c1_30, %c0_31], %12 {strides = array<i32>} : memref<1x18x18x4xf32, #tpu.memory_space<vmem>>, vector<1x1x16x4xf32>,
    %c0_32 = arith.constant 0 : index
    %c0_33 = arith.constant 0 : index
    %c0_34 = arith.constant 0 : index
    %15 = vector.load %arg6[%c0_32, %c0_33, %c0_34] : memref<3x3x4xf32, #tpu.memory_space<vmem>>, vector<3x3x4xf32>
    %c0_35 = arith.constant 0 : index
    %c0_36 = arith.constant 0 : index
    %16 = vector.load %arg7[%c0_35, %c0_36] : memref<1x4xf32, #tpu.memory_space<vmem>>, vector<1x4xf32>
    %17 = vector.shape_cast %16 : vector<1x4xf32> to vector<1x1x1x4xf32>
    %18 = vector.shape_cast %17 : vector<1x1x1x4xf32> to vector<1x1x1x4xf32>
    %19 = vector.broadcast %18 : vector<1x1x1x4xf32> to vector<1x16x16x4xf32>
    %20 = vector.extract_strided_slice %15 {offsets = [0, 0, 0], sizes = [1, 1, 4], strides = [1, 1, 1]} : vector<3x3x4xf32> to vector<1x1x4xf32>
    %21 = vector.shape_cast %20 : vector<1x1x4xf32> to vector<4xf32>
    %22 = vector.shape_cast %21 : vector<4xf32> to vector<1x1x1x4xf32>
    %c0_37 = arith.constant 0 : index
    %c0_38 = arith.constant 0 : index
    %c0_39 = arith.constant 0 : index
    %c0_40 = arith.constant 0 : index
    %23 = vector.load %arg9[%c0_37, %c0_38, %c0_39, %c0_40] : memref<1x18x18x4xf32, #tpu.memory_space<vmem>>, vector<1x16x16x4xf32>
    %24 = vector.broadcast %22 : vector<1x1x1x4xf32> to vector<1x16x16x4xf32>
    %25 = arith.mulf %24, %23 : vector<1x16x16x4xf32>
    %26 = arith.addf %19, %25 : vector<1x16x16x4xf32>
    %27 = vector.extract_strided_slice %15 {offsets = [0, 1, 0], sizes = [1, 1, 4], strides = [1, 1, 1]} : vector<3x3x4xf32> to vector<1x1x4xf32>
    %28 = vector.shape_cast %27 : vector<1x1x4xf32> to vector<4xf32>
    %29 = vector.shape_cast %28 : vector<4xf32> to vector<1x1x1x4xf32>
    %c0_41 = arith.constant 0 : index
    %c0_42 = arith.constant 0 : index
    %c1_43 = arith.constant 1 : index
    %c0_44 = arith.constant 0 : index
    %30 = vector.load %arg9[%c0_41, %c0_42, %c1_43, %c0_44] : memref<1x18x18x4xf32, #tpu.memory_space<vmem>>, vector<1x16x16x4xf32>
    %31 = vector.broadcast %29 : vector<1x1x1x4xf32> to vector<1x16x16x4xf32>
    %32 = arith.mulf %31, %30 : vector<1x16x16x4xf32>
    %33 = arith.addf %26, %32 : vector<1x16x16x4xf32>
    %34 = vector.extract_strided_slice %15 {offsets = [0, 2, 0], sizes = [1, 1, 4], strides = [1, 1, 1]} : vector<3x3x4xf32> to vector<1x1x4xf32>
    %35 = vector.shape_cast %34 : vector<1x1x4xf32> to vector<4xf32>
    %36 = vector.shape_cast %35 : vector<4xf32> to vector<1x1x1x4xf32>
    %c0_45 = arith.constant 0 : index
    %c0_46 = arith.constant 0 : index
    %c2 = arith.constant 2 : index
    %c0_47 = arith.constant 0 : index
    %37 = vector.load %arg9[%c0_45, %c0_46, %c2, %c0_47] : memref<1x18x18x4xf32, #tpu.memory_space<vmem>>, vector<1x16x16x4xf32>
    %38 = vector.broadcast %36 : vector<1x1x1x4xf32> to vector<1x16x16x4xf32>
    %39 = arith.mulf %38, %37 : vector<1x16x16x4xf32>
    %40 = arith.addf %33, %39 : vector<1x16x16x4xf32>
    %41 = vector.extract_strided_slice %15 {offsets = [1, 0, 0], sizes = [1, 1, 4], strides = [1, 1, 1]} : vector<3x3x4xf32> to vector<1x1x4xf32>
    %42 = vector.shape_cast %41 : vector<1x1x4xf32> to vector<4xf32>
    %43 = vector.shape_cast %42 : vector<4xf32> to vector<1x1x1x4xf32>
    %c0_48 = arith.constant 0 : index
    %c1_49 = arith.constant 1 : index
    %c0_50 = arith.constant 0 : index
    %c0_51 = arith.constant 0 : index
    %44 = vector.load %arg9[%c0_48, %c1_49, %c0_50, %c0_51] : memref<1x18x18x4xf32, #tpu.memory_space<vmem>>, vector<1x16x16x4xf32>
    %45 = vector.broadcast %43 : vector<1x1x1x4xf32> to vector<1x16x16x4xf32>
    %46 = arith.mulf %45, %44 : vector<1x16x16x4xf32>
    %47 = arith.addf %40, %46 : vector<1x16x16x4xf32>
    %48 = vector.extract_strided_slice %15 {offsets = [1, 1, 0], sizes = [1, 1, 4], strides = [1, 1, 1]} : vector<3x3x4xf32> to vector<1x1x4xf32>
    %49 = vector.shape_cast %48 : vector<1x1x4xf32> to vector<4xf32>
    %50 = vector.shape_cast %49 : vector<4xf32> to vector<1x1x1x4xf32>
    %c0_52 = arith.constant 0 : index
    %c1_53 = arith.constant 1 : index
    %c1_54 = arith.constant 1 : index
    %c0_55 = arith.constant 0 : index
    %51 = vector.load %arg9[%c0_52, %c1_53, %c1_54, %c0_55] : memref<1x18x18x4xf32, #tpu.memory_space<vmem>>, vector<1x16x16x4xf32>
    %52 = vector.broadcast %50 : vector<1x1x1x4xf32> to vector<1x16x16x4xf32>
    %53 = arith.mulf %52, %51 : vector<1x16x16x4xf32>
    %54 = arith.addf %47, %53 : vector<1x16x16x4xf32>
    %55 = vector.extract_strided_slice %15 {offsets = [1, 2, 0], sizes = [1, 1, 4], strides = [1, 1, 1]} : vector<3x3x4xf32> to vector<1x1x4xf32>
    %56 = vector.shape_cast %55 : vector<1x1x4xf32> to vector<4xf32>
    %57 = vector.shape_cast %56 : vector<4xf32> to vector<1x1x1x4xf32>
    %c0_56 = arith.constant 0 : index
    %c1_57 = arith.constant 1 : index
    %c2_58 = arith.constant 2 : index
    %c0_59 = arith.constant 0 : index
    %58 = vector.load %arg9[%c0_56, %c1_57, %c2_58, %c0_59] : memref<1x18x18x4xf32, #tpu.memory_space<vmem>>, vector<1x16x16x4xf32>
    %59 = vector.broadcast %57 : vector<1x1x1x4xf32> to vector<1x16x16x4xf32>
    %60 = arith.mulf %59, %58 : vector<1x16x16x4xf32>
    %61 = arith.addf %54, %60 : vector<1x16x16x4xf32>
    %62 = vector.extract_strided_slice %15 {offsets = [2, 0, 0], sizes = [1, 1, 4], strides = [1, 1, 1]} : vector<3x3x4xf32> to vector<1x1x4xf32>
    %63 = vector.shape_cast %62 : vector<1x1x4xf32> to vector<4xf32>
    %64 = vector.shape_cast %63 : vector<4xf32> to vector<1x1x1x4xf32>
    %c0_60 = arith.constant 0 : index
    %c2_61 = arith.constant 2 : index
    %c0_62 = arith.constant 0 : index
    %c0_63 = arith.constant 0 : index
    %65 = vector.load %arg9[%c0_60, %c2_61, %c0_62, %c0_63] : memref<1x18x18x4xf32, #tpu.memory_space<vmem>>, vector<1x16x16x4xf32>
    %66 = vector.broadcast %64 : vector<1x1x1x4xf32> to vector<1x16x16x4xf32>
    %67 = arith.mulf %66, %65 : vector<1x16x16x4xf32>
    %68 = arith.addf %61, %67 : vector<1x16x16x4xf32>
    %69 = vector.extract_strided_slice %15 {offsets = [2, 1, 0], sizes = [1, 1, 4], strides = [1, 1, 1]} : vector<3x3x4xf32> to vector<1x1x4xf32>
    %70 = vector.shape_cast %69 : vector<1x1x4xf32> to vector<4xf32>
    %71 = vector.shape_cast %70 : vector<4xf32> to vector<1x1x1x4xf32>
    %c0_64 = arith.constant 0 : index
    %c2_65 = arith.constant 2 : index
    %c1_66 = arith.constant 1 : index
    %c0_67 = arith.constant 0 : index
    %72 = vector.load %arg9[%c0_64, %c2_65, %c1_66, %c0_67] : memref<1x18x18x4xf32, #tpu.memory_space<vmem>>, vector<1x16x16x4xf32>
    %73 = vector.broadcast %71 : vector<1x1x1x4xf32> to vector<1x16x16x4xf32>
    %74 = arith.mulf %73, %72 : vector<1x16x16x4xf32>
    %75 = arith.addf %68, %74 : vector<1x16x16x4xf32>
    %76 = vector.extract_strided_slice %15 {offsets = [2, 2, 0], sizes = [1, 1, 4], strides = [1, 1, 1]} : vector<3x3x4xf32> to vector<1x1x4xf32>
    %77 = vector.shape_cast %76 : vector<1x1x4xf32> to vector<4xf32>
    %78 = vector.shape_cast %77 : vector<4xf32> to vector<1x1x1x4xf32>
    %c0_68 = arith.constant 0 : index
    %c2_69 = arith.constant 2 : index
    %c2_70 = arith.constant 2 : index
    %c0_71 = arith.constant 0 : index
    %79 = vector.load %arg9[%c0_68, %c2_69, %c2_70, %c0_71] : memref<1x18x18x4xf32, #tpu.memory_space<vmem>>, vector<1x16x16x4xf32>
    %80 = vector.broadcast %78 : vector<1x1x1x4xf32> to vector<1x16x16x4xf32>
    %81 = arith.mulf %80, %79 : vector<1x16x16x4xf32>
    %82 = arith.addf %75, %81 : vector<1x16x16x4xf32>
    %c0_72 = arith.constant 0 : index
    %c0_73 = arith.constant 0 : index
    %c0_74 = arith.constant 0 : index
    %c0_75 = arith.constant 0 : index
    %83 = vector.load %arg8[%c0_72, %c0_73, %c0_74, %c0_75] : memref<1x16x16x4xf32, #tpu.memory_space<vmem>>, vector<1x16x16x4xf32>
    tpu.vector_store %arg8[%c0_72, %c0_73, %c0_74, %c0_75], %82 {strides = array<i32>} : memref<1x16x16x4xf32, #tpu.memory_space<vmem>>, vector<1x16x16x4xf32>,
    return
  }
  func.func @transform_0(%arg0: i32, %arg1: i32, %arg2: i32) -> (i32, i32, i32, i32) {
    %c0_i32 = arith.constant 0 : i32
    %c0_i32_0 = arith.constant 0 : i32
    return %arg1, %arg2, %c0_i32, %arg0 : i32, i32, i32, i32
  }
  func.func @transform_1(%arg0: i32, %arg1: i32, %arg2: i32) -> (i32, i32, i32, i32) {
    %c16_i32 = arith.constant 16 : i32
    %0 = arith.muli %arg2, %c16_i32 : i32
    %c1_i32 = arith.constant 1 : i32
    %1 = arith.subi %0, %c1_i32 : i32
    %c0_i32 = arith.constant 0 : i32
    %2 = arith.maxsi %1, %c0_i32 : i32
    %c0_i32_0 = arith.constant 0 : i32
    %c0_i32_1 = arith.constant 0 : i32
    return %arg1, %2, %c0_i32_0, %arg0 : i32, i32, i32, i32
  }
  func.func @transform_2(%arg0: i32, %arg1: i32, %arg2: i32) -> (i32, i32, i32, i32) {
    %c1_i32 = arith.constant 1 : i32
    %0 = arith.addi %arg2, %c1_i32 : i32
    %c16_i32 = arith.constant 16 : i32
    %1 = arith.muli %0, %c16_i32 : i32
    %c15_i32 = arith.constant 15 : i32
    %2 = arith.minsi %1, %c15_i32 : i32
    %c0_i32 = arith.constant 0 : i32
    %c0_i32_0 = arith.constant 0 : i32
    return %arg1, %2, %c0_i32, %arg0 : i32, i32, i32, i32
  }
  func.func @transform_3(%arg0: i32, %arg1: i32, %arg2: i32) -> (i32, i32, i32) {
    %c0_i32 = arith.constant 0 : i32
    %c0_i32_0 = arith.constant 0 : i32
    %c0_i32_1 = arith.constant 0 : i32
    return %c0_i32, %c0_i32_0, %arg0 : i32, i32, i32
  }
  func.func @transform_4(%arg0: i32, %arg1: i32, %arg2: i32) -> (i32, i32) {
    %c0_i32 = arith.constant 0 : i32
    %c0_i32_0 = arith.constant 0 : i32
    return %c0_i32, %arg0 : i32, i32
  }
  func.func @transform_5(%arg0: i32, %arg1: i32, %arg2: i32) -> (i32, i32, i32, i32) {
    %c0_i32 = arith.constant 0 : i32
    %c0_i32_0 = arith.constant 0 : i32
    return %arg1, %arg2, %c0_i32, %arg0 : i32, i32, i32, i32
  }
}

</mosaic_0001>

<bundles_post_ra>
// kernel: tpu_custom_call.1
= control target key start
LH: loop header
LB: loop body
LE: loop exit
PB: predicated region body
PF: predicated region fallthrough
CT: control target
= control target key end

     0   :  { %s1796_s18 = smov 0   ;;  %s1798_s19 = smov 0   ;;  %s2432_s0 = inlined_call_operand.vmem [shape: f32[2,16,16,4], index: 0, kind: input, shape index: {}]   ;;  %s2433_s1 = inlined_call_operand.vmem [shape: f32[2,16,16,4], index: 1, kind: input, shape index: {}]   ;;  %s2434_s2 = inlined_call_operand.vmem [shape: f32[2,16,16,4], index: 2, kind: input, shape index: {}]   ;;  %s2435_s3 = inlined_call_operand.vmem [shape: f32[3,3,4], index: 3, kind: input, shape index: {}]   ;;  %s2436_s4 = inlined_call_operand.vmem [shape: f32[1,4], index: 4, kind: input, shape index: {}]   ;;  %s2437_s5 = inlined_call_operand.vmem [shape: f32[2,16,16,4], index: 5, kind: output, shape index: {}]  }
   0x1   :  { %s1800_s20 = smov 0  }
   0x2 LB: > { %s30_s1 = sadd.s32 1, %s1759_s19  ;;  %p1698_p0 = scmp.ge.s32.totalorder %s1763_s20, 1  ;;  %s1763_s20 = sphi %s1800_s20, %s15_s20   ;;  %s1759_s19 = sphi %s1798_s19, %s2439_s19   ;;  %s1755_s18 = sphi %s1796_s18, %s2438_s18  }
   0x3   : > { %p32_p1 = scmp.ge.s32.totalorder %s30_s1, 2  ;;  %p314_p2 = scmp.lt.s32.totalorder %s1763_s20, 3 }
   0x5   : > { %s2441_s1 = smov (%p32_p1, %s30_s1), 0  ;;  %p315_p3 = pnand %p1698_p0, %p314_p2 }
   0x6   : > { %p398_p4 = scmp.lt.s32.totalorder (!%p315_p3), %s1755_s18, 1 }
   0x7   : > { %318 = sbr.rel (%p315_p3) target bundleno = 213 (0xd5), region = 40 }
   0xc   : > { %vm472_vm0 = vcmask 24576   ;;  %v1765_v0 = vmov 0.0   ;;  %s2443_s18 = smov (!%p398_p4, %s1755_s18), 1  ;;  %vm542_vm1 = vcmask 31744   ;;  %v592_v2 = vld [vmem:[%s2435_s3] sm:$0x7] }
   0xd   : > { %473 = vst.msk [vmem:[#allocation2] sm:$0x1] %vm472_vm0, %v1765_v0  ;;  %s1709_s2 = sshll.u32 %s2443_s18, 8  ;;  %v1876_v6 = vperm.slane %v592_v2, 0  ;;  %v1878_v7 = vperm.slane %v592_v2, 1  ;;  %v1893_v13 = vperm.slane %v592_v2, 2 }
   0xe   : > { %474 = vst.msk [vmem:[#allocation2 + $0x18] sm:$0x1] %vm472_vm0, %v1765_v0  ;;  %s1861_s23 = scalar_lea.vmem %s2432_s0, %s1709_s2  ;;  %v593_v9 = vld [vmem:[%s2435_s3 + $0x4] sm:$0x7]  ;;  %v1891_v12 = vld [vmem:[%s2436_s4] ss:$0 sm:$0xff]  ;;  %s2067_s9 = scalar_lea.vmem %s2437_s5, %s1709_s2 }
   0xf   : > { %475 = vst.msk [vmem:[#allocation2 + $0x30] sm:$0x1] %vm472_vm0, %v1765_v0  ;;  %v509_v1 = vld [vmem:[%s1861_s23] sm:$0xff]  ;;  %v510_v3 = vld [vmem:[%s1861_s23 + $0x8] sm:$0xff]  ;;  %v511_v4 = vld [vmem:[%s1861_s23 + $0x10] sm:$0xff]  ;;  %v1900_v20 = vperm.slane %v593_v9, 0 }
  0x10   : > { %476 = vst.msk [vmem:[#allocation2 + $0x48] sm:$0x1] %vm472_vm0, %v1765_v0  ;;  %v512_v5 = vld [vmem:[%s1861_s23 + $0x18] sm:$0xff]  ;;  %v513_v8 = vld [vmem:[%s1861_s23 + $0x20] sm:$0xff]  ;;  %v514_v10 = vld [vmem:[%s1861_s23 + $0x28] sm:$0xff]  ;;  %v1920_v38 = vperm.slane %v593_v9, 1 }
  0x11   : > { %477 = vst.msk [vmem:[#allocation2 + $0x60] sm:$0x1] %vm472_vm0, %v1765_v0  ;;  %v515_v11 = vld [vmem:[%s1861_s23 + $0x30] sm:$0xff]  ;;  %v516_v14 = vld [vmem:[%s1861_s23 + $0x38] sm:$0xff]  ;;  %v517_v23 = vld [vmem:[%s1861_s23 + $0x40] sm:$0xff]  ;;  %v1928_v47 = vperm.slane %v593_v9, 2 }
  0x12   : > { %478 = vst.msk [vmem:[#allocation2 + $0x78] sm:$0x1] %vm472_vm0, %v1765_v0  ;;  %v518_v27 = vld [vmem:[%s1861_s23 + $0x48] sm:$0xff]  ;;  %v519_v30 = vld [vmem:[%s1861_s23 + $0x50] sm:$0xff]  ;;  %v520_v34 = vld [vmem:[%s1861_s23 + $0x58] sm:$0xff] }
  0x13   : > { %479 = vst.msk [vmem:[#allocation2 + $0x90] sm:$0x1] %vm472_vm0, %v1765_v0  ;;  %v594_v35 = vld [vmem:[%s2435_s3 + $0x8] sm:$0x7]  ;;  %v521_v41 = vld [vmem:[%s1861_s23 + $0x60] sm:$0xff]  ;;  %v523_v49 = vld [vmem:[%s1861_s23 + $0x70] sm:$0xff] }
  0x14   : > { %480 = vst.msk [vmem:[#allocation2 + $0xa8] sm:$0x1] %vm472_vm0, %v1765_v0  ;;  %v522_v45 = vld [vmem:[%s1861_s23 + $0x68] sm:$0xff]  ;;  %v1932_v51 = vperm.slane %v594_v35, 0  ;;  %v1934_v52 = vperm.slane %v594_v35, 1  ;;  %v524_v54 = vld [vmem:[%s1861_s23 + $0x78] sm:$0xff] }
  0x15   : > { %481 = vst.msk [vmem:[#allocation2 + $0xc0] sm:$0x1] %vm472_vm0, %v1765_v0  ;;  %v525_v61 = vld [vmem:[%s1861_s23 + $0x80] sm:$0xff]  ;;  %v1945_v63 = vperm.slane %v594_v35, 2  ;;  %v526_v2 = vld [vmem:[%s1861_s23 + $0x88] sm:$0xff] }
  0x16   : > { %482 = vst.msk [vmem:[#allocation2 + $0xd8] sm:$0x1] %vm472_vm0, %v1765_v0 }
  0x17   : > { %483 = vst.msk [vmem:[#allocation2 + $0xf0] sm:$0x1] %vm472_vm0, %v1765_v0 }
  0x18   : > { %484 = vst.msk [vmem:[#allocation2 + $0x108] sm:$0x1] %vm472_vm0, %v1765_v0 }
  0x19   : > { %485 = vst.msk [vmem:[#allocation2 + $0x120] sm:$0x1] %vm472_vm0, %v1765_v0 }
  0x1a   : > { %486 = vst.msk [vmem:[#allocation2 + $0x138] sm:$0x1] %vm472_vm0, %v1765_v0 }
  0x1b   : > { %487 = vst.msk [vmem:[#allocation2 + $0x150] sm:$0x1] %vm472_vm0, %v1765_v0 }
  0x1c   : > { %488 = vst.msk [vmem:[#allocation2 + $0x168] sm:$0x1] %vm472_vm0, %v1765_v0 }
  0x1d   : > { %489 = vst.msk [vmem:[#allocation2 + $0x180] sm:$0x1] %vm472_vm0, %v1765_v0 }
  0x1e   : > { %490 = vst.msk [vmem:[#allocation2 + $0x198] sm:$0x1] %vm472_vm0, %v1765_v0 }
  0x1f   : > { %491 = vst.msk [vmem:[#allocation2 + $0x11] sm:$0x1] %vm472_vm0, %v1765_v0 }
  0x20   : > { %492 = vst.msk [vmem:[#allocation2 + $0x29] sm:$0x1] %vm472_vm0, %v1765_v0 }
  0x21   : > { %493 = vst.msk [vmem:[#allocation2 + $0x41] sm:$0x1] %vm472_vm0, %v1765_v0 }
  0x22   : > { %494 = vst.msk [vmem:[#allocation2 + $0x59] sm:$0x1] %vm472_vm0, %v1765_v0 }
  0x23   : > { %495 = vst.msk [vmem:[#allocation2 + $0x71] sm:$0x1] %vm472_vm0, %v1765_v0 }
  0x24   : > { %496 = vst.msk [vmem:[#allocation2 + $0x89] sm:$0x1] %vm472_vm0, %v1765_v0 }
  0x25   : > { %497 = vst.msk [vmem:[#allocation2 + $0xa1] sm:$0x1] %vm472_vm0, %v1765_v0 }
  0x26   : > { %498 = vst.msk [vmem:[#allocation2 + $0xb9] sm:$0x1] %vm472_vm0, %v1765_v0 }
  0x27   : > { %499 = vst.msk [vmem:[#allocation2 + $0xd1] sm:$0x1] %vm472_vm0, %v1765_v0 }
  0x28   : > { %500 = vst.msk [vmem:[#allocation2 + $0xe9] sm:$0x1] %vm472_vm0, %v1765_v0 }
  0x29   : > { %501 = vst.msk [vmem:[#allocation2 + $0x101] sm:$0x1] %vm472_vm0, %v1765_v0 }
  0x2a   : > { %502 = vst.msk [vmem:[#allocation2 + $0x119] sm:$0x1] %vm472_vm0, %v1765_v0 }
  0x2b   : > { %503 = vst.msk [vmem:[#allocation2 + $0x131] sm:$0x1] %vm472_vm0, %v1765_v0 }
  0x2c   : > { %504 = vst.msk [vmem:[#allocation2 + $0x149] sm:$0x1] %vm472_vm0, %v1765_v0 }
  0x2d   : > { %505 = vst.msk [vmem:[#allocation2 + $0x161] sm:$0x1] %vm472_vm0, %v1765_v0 }
  0x2e   : > { %506 = vst.msk [vmem:[#allocation2 + $0x179] sm:$0x1] %vm472_vm0, %v1765_v0 }
  0x2f   : > { %507 = vst.msk [vmem:[#allocation2 + $0x191] sm:$0x1] %vm472_vm0, %v1765_v0 }
  0x30   : > { %508 = vst.msk [vmem:[#allocation2 + $0x1a9] sm:$0x1] %vm472_vm0, %v1765_v0 }
  0x31   : > { %587 = vst.msk [vmem:[#allocation2 + $0x1] sm:$0xff] %vm542_vm1, %v1765_v0 }
  0x32   : > { %588 = vst.msk [vmem:[#allocation2 + $0x9] sm:$0xff] %vm542_vm1, %v1765_v0 }
  0x33   : > { %590 = vst.msk [vmem:[#allocation2 + $0x199] sm:$0xff] %vm542_vm1, %v1765_v0 }
  0x34   : > { %591 = vst.msk [vmem:[#allocation2 + $0x1a1] sm:$0xff] %vm542_vm1, %v1765_v0 }
  0x35   : > { %543 = vst.msk [vmem:[#allocation2 + $0x19] sm:$0xff] %vm542_vm1, %v509_v1 }
  0x36   : > { %544 = vst.msk [vmem:[#allocation2 + $0x21] sm:$0xff] %vm542_vm1, %v510_v3 }
  0x37   : > { %545 = vst.msk [vmem:[#allocation2 + $0x31] sm:$0xff] %vm542_vm1, %v511_v4 }
  0x38   : > { %546 = vst.msk [vmem:[#allocation2 + $0x39] sm:$0xff] %vm542_vm1, %v512_v5  ;;  %v599_v15 = vld [vmem:[#allocation2] sm:$0xff] }
  0x39   : > { %v696_v16 = vld [vmem:[#allocation2 + $0x1] sm:$0xff]  ;;  %547 = vst.msk [vmem:[#allocation2 + $0x49] sm:$0xff] %vm542_vm1, %v513_v8  ;;  %v632_v17 = vmul.f32 %v1876_v6, %v599_v15  ;;  %v697_v22 = vld [vmem:[#allocation2 + $0x9] sm:$0xff] }
  0x3a   : > { %v729_v18 = vmul.f32 %v1878_v7, %v696_v16  ;;  %v793_v19 = vld [vmem:[#allocation2 + $0x2] sm:$0xff]  ;;  %548 = vst.msk [vmem:[#allocation2 + $0x51] sm:$0xff] %vm542_vm1, %v514_v10  ;;  %v730_v25 = vmul.f32 %v1878_v7, %v697_v22  ;;  %v794_v26 = vld [vmem:[#allocation2 + $0xa] sm:$0xff] }
  0x3b   : > { %v600_v21 = vld [vmem:[#allocation2 + $0x8] sm:$0xff]  ;;  %549 = vst.msk [vmem:[#allocation2 + $0x61] sm:$0xff] %vm542_vm1, %v515_v11  ;;  %v664_v28 = vadd.f32 %v1891_v12, %v632_v17  ;;  %v826_v29 = vmul.f32 %v1893_v13, %v793_v19  ;;  %v827_v33 = vmul.f32 %v1893_v13, %v794_v26  ;;  %v527_v10 = vld [vmem:[%s1861_s23 + $0x90] sm:$0xff]  ;;  %v528_v19 = vld [vmem:[%s1861_s23 + $0x98] sm:$0xff] }
  0x3c   : > { %v633_v24 = vmul.f32 %v1876_v6, %v600_v21  ;;  %550 = vst.msk [vmem:[#allocation2 + $0x69] sm:$0xff] %vm542_vm1, %v516_v14  ;;  %v890_v31 = vld [vmem:[#allocation2 + $0x18] sm:$0xff]  ;;  %v529_v26 = vld [vmem:[%s1861_s23 + $0xa0] sm:$0xff] }
  0x3d   : > { %551 = vst.msk [vmem:[#allocation2 + $0x79] sm:$0xff] %vm542_vm1, %v517_v23  ;;  %v761_v36 = vadd.f32 %v729_v18, %v664_v28  ;;  %v923_v37 = vmul.f32 %v1900_v20, %v890_v31  ;;  %v891_v39 = vld [vmem:[#allocation2 + $0x20] sm:$0xff]  ;;  %v634_v40 = vmul.f32 %v890_v31, %v1876_v6  ;;  %v530_v31 = vld [vmem:[%s1861_s23 + $0xa8] sm:$0xff] }
  0x3e   : > { %v665_v32 = vadd.f32 %v1891_v12, %v633_v24  ;;  %552 = vst.msk [vmem:[#allocation2 + $0x81] sm:$0xff] %vm542_vm1, %v518_v27  ;;  %v987_v42 = vld [vmem:[#allocation2 + $0x19] sm:$0xff]  ;;  %v924_v44 = vmul.f32 %v1900_v20, %v891_v39  ;;  %v988_v48 = vld [vmem:[#allocation2 + $0x21] sm:$0xff]  ;;  %v1182_v57 = vld [vmem:[#allocation2 + $0x30] sm:$0xff]  ;;  %v635_v18 = vmul.f32 %v891_v39, %v1876_v6 }
  0x3f   : > { %553 = vst.msk [vmem:[#allocation2 + $0x91] sm:$0xff] %vm542_vm1, %v519_v30  ;;  %v858_v46 = vadd.f32 %v826_v29, %v761_v36  ;;  %v1084_v50 = vld [vmem:[#allocation2 + $0x1a] sm:$0xff]  ;;  %v1020_v56 = vmul.f32 %v1920_v38, %v987_v42  ;;  %v1085_v58 = vld [vmem:[#allocation2 + $0x22] sm:$0xff]  ;;  %v666_v59 = vadd.f32 %v1891_v12, %v634_v40  ;;  %v731_v60 = vmul.f32 %v987_v42, %v1878_v7  ;;  %v1943_v62 = vld [vmem:[#allocation2 + $0x31] sm:$0xff] }
  0x40   : > { %v762_v43 = vadd.f32 %v730_v25, %v665_v32  ;;  %554 = vst.msk [vmem:[#allocation2 + $0x99] sm:$0xff] %vm542_vm1, %v520_v34  ;;  %v1021_v1 = vmul.f32 %v1920_v38, %v988_v48  ;;  %v1117_v4 = vmul.f32 %v1928_v47, %v1084_v50  ;;  %v1951_v5 = vld [vmem:[#allocation2 + $0x32] sm:$0xff]  ;;  %v828_v9 = vmul.f32 %v1084_v50, %v1893_v13  ;;  %v1967_v23 = vld [vmem:[#allocation2 + $0x3a] sm:$0xff]  ;;  %v1986_v36 = vld [vmem:[#allocation2 + $0x48] sm:$0xff] }
  0x41   : > { %555 = vst.msk [vmem:[#allocation2 + $0xa9] sm:$0xff] %vm542_vm1, %v521_v41  ;;  %v955_v55 = vadd.f32 %v923_v37, %v858_v46  ;;  %v763_v8 = vadd.f32 %v731_v60, %v666_v59  ;;  %v1215_v11 = vmul.f32 %v1932_v51, %v1182_v57  ;;  %v1118_v15 = vmul.f32 %v1928_v47, %v1085_v58  ;;  %v1958_v16 = vld [vmem:[#allocation2 + $0x38] sm:$0xff]  ;;  %v1988_v37 = vld [vmem:[#allocation2 + $0x49] sm:$0xff] }
  0x42   : > { %v859_v53 = vadd.f32 %v827_v33, %v762_v43  ;;  %556 = vst.msk [vmem:[#allocation2 + $0xb1] sm:$0xff] %vm542_vm1, %v522_v45  ;;  %v1960_v17 = vld [vmem:[#allocation2 + $0x39] sm:$0xff]  ;;  %v1312_v22 = vmul.f32 %v1934_v52, %v1943_v62  ;;  %v925_v25 = vmul.f32 %v1182_v57, %v1900_v20  ;;  %v1974_v27 = vmul.f32 %v1945_v63, %v1951_v5  ;;  %v531_v39 = vld [vmem:[%s1861_s23 + $0xb0] sm:$0xff]  ;;  %v534_v59 = vld [vmem:[%s1861_s23 + $0xc8] sm:$0xff] }
  0x43   : > { %557 = vst.msk [vmem:[#allocation2 + $0xc1] sm:$0xff] %vm542_vm1, %v523_v49  ;;  %v1052_v3 = vadd.f32 %v1020_v56, %v955_v55  ;;  %v860_v24 = vadd.f32 %v828_v9, %v763_v8  ;;  %v667_v29 = vadd.f32 %v1891_v12, %v635_v18  ;;  %v732_v30 = vmul.f32 %v988_v48, %v1878_v7  ;;  %v1994_v42 = vld [vmem:[#allocation2 + $0x4a] sm:$0xff]  ;;  %v532_v45 = vld [vmem:[%s1861_s23 + $0xb8] sm:$0xff] }
  0x44   : > { %v956_v0 = vadd.f32 %v924_v44, %v859_v53  ;;  %558 = vst.msk [vmem:[#allocation2 + $0xc9] sm:$0xff] %vm542_vm1, %v524_v54  ;;  %v1216_v32 = vmul.f32 %v1932_v51, %v1958_v16  ;;  %v1313_v33 = vmul.f32 %v1934_v52, %v1960_v17  ;;  %v1022_v35 = vmul.f32 %v1943_v62, %v1920_v38  ;;  %v533_v53 = vld [vmem:[%s1861_s23 + $0xc0] sm:$0xff] }
  0x45   : > { %559 = vst.msk [vmem:[#allocation2 + $0xd9] sm:$0xff] %vm542_vm1, %v525_v61  ;;  %v1149_v21 = vadd.f32 %v1117_v4, %v1052_v3  ;;  %v957_v34 = vadd.f32 %v925_v25, %v860_v24  ;;  %v1410_v41 = vmul.f32 %v1945_v63, %v1967_v23  ;;  %v764_v43 = vadd.f32 %v732_v30, %v667_v29  ;;  %v2014_v61 = vld [vmem:[#allocation2 + $0x50] sm:$0xff] }
  0x46   : > { %v1053_v14 = vadd.f32 %v1021_v1, %v956_v0  ;;  %560 = vst.msk [vmem:[#allocation2 + $0xe1] sm:$0xff] %vm542_vm1, %v526_v2  ;;  %v829_v44 = vmul.f32 %v1085_v58, %v1893_v13  ;;  %v1119_v49 = vmul.f32 %v1951_v5, %v1928_v47  ;;  %v636_v50 = vmul.f32 %v1182_v57, %v1876_v6  ;;  %v2016_v0 = vld [vmem:[#allocation2 + $0x51] sm:$0xff] }
  0x47   : > { %561 = vst.msk [vmem:[#allocation2 + $0xf1] sm:$0xff] %vm542_vm1, %v527_v10  ;;  %v1247_v40 = vadd.f32 %v1215_v11, %v1149_v21  ;;  %v1054_v48 = vadd.f32 %v1022_v35, %v957_v34  ;;  %v1217_v54 = vmul.f32 %v1932_v51, %v1986_v36  ;;  %v1314_v55 = vmul.f32 %v1934_v52, %v1988_v37  ;;  %v535_v3 = vld [vmem:[%s1861_s23 + $0xd0] sm:$0xff]  ;;  %v537_v21 = vld [vmem:[%s1861_s23 + $0xe0] sm:$0xff] }
  0x48   : > { %v1150_v28 = vadd.f32 %v1118_v15, %v1053_v14  ;;  %562 = vst.msk [vmem:[#allocation2 + $0xf9] sm:$0xff] %vm542_vm1, %v528_v19  ;;  %v861_v56 = vadd.f32 %v829_v44, %v764_v43  ;;  %v926_v58 = vmul.f32 %v1958_v16, %v1900_v20  ;;  %v1411_v57 = vmul.f32 %v1945_v63, %v1994_v42  ;;  %v2027_v11 = vld [vmem:[#allocation2 + $0x52] sm:$0xff]  ;;  %v2050_v35 = vld [vmem:[#allocation2 + $0x60] sm:$0xff] }
  0x49   : > { %563 = vst.msk [vmem:[#allocation2 + $0x109] sm:$0xff] %vm542_vm1, %v529_v26  ;;  %v1151_v60 = vadd.f32 %v1119_v49, %v1054_v48  ;;  %v668_v1 = vadd.f32 %v1891_v12, %v636_v50  ;;  %v733_v2 = vmul.f32 %v1943_v62, %v1878_v7  ;;  %v1344_v4 = vadd.f32 %v1312_v22, %v1247_v40  ;;  %v536_v14 = vld [vmem:[%s1861_s23 + $0xd8] sm:$0xff] }
  0x4a   : > { %v1248_v46 = vadd.f32 %v1216_v32, %v1150_v28  ;;  %564 = vst.msk [vmem:[#allocation2 + $0x111] sm:$0xff] %vm542_vm1, %v530_v31  ;;  %v958_v8 = vadd.f32 %v926_v58, %v861_v56  ;;  %v1023_v9 = vmul.f32 %v1960_v17, %v1920_v38  ;;  %v1120_v10 = vmul.f32 %v1967_v23, %v1928_v47  ;;  %v538_v28 = vld [vmem:[%s1861_s23 + $0xe8] sm:$0xff]  ;;  %v539_v32 = vld [vmem:[%s1861_s23 + $0xf0] sm:$0xff]  ;;  %v540_v40 = vld [vmem:[%s1861_s23 + $0xf8] sm:$0xff] }
  0x4b   : > { %565 = vst.msk [vmem:[#allocation2 + $0x121] sm:$0xff] %vm542_vm1, %v531_v39  ;;  %v1249_v18 = vadd.f32 %v1217_v54, %v1151_v60  ;;  %v765_v62 = vadd.f32 %v733_v2, %v668_v1  ;;  %v830_v19 = vmul.f32 %v1951_v5, %v1893_v13  ;;  %v1218_v24 = vmul.f32 %v1932_v51, %v2014_v61  ;;  %v1380_v58 = vld [vmem:[#allocation2 + $0x62] sm:$0xff] }
  0x4c   : > { %566 = vst.msk [vmem:[#allocation2 + $0x129] sm:$0xff] %vm542_vm1, %v532_v45  ;;  %v1345_v15 = vadd.f32 %v1313_v33, %v1248_v46  ;;  %v1055_v22 = vadd.f32 %v1023_v9, %v958_v8  ;;  %v1315_v25 = vmul.f32 %v1934_v52, %v2016_v0  ;;  %v637_v26 = vmul.f32 %v1958_v16, %v1876_v6  ;;  %v1187_v8 = vld [vmem:[#allocation2 + $0x68] sm:$0xff] }
  0x4d   : > { %567 = vst.msk [vmem:[#allocation2 + $0x139] sm:$0xff] %vm542_vm1, %v533_v53  ;;  %v1346_v29 = vadd.f32 %v1314_v55, %v1249_v18  ;;  %v1412_v5 = vmul.f32 %v1945_v63, %v2027_v11  ;;  %v862_v30 = vadd.f32 %v830_v19, %v765_v62  ;;  %v927_v31 = vmul.f32 %v1986_v36, %v1900_v20  ;;  %v1284_v9 = vld [vmem:[#allocation2 + $0x69] sm:$0xff] }
  0x4e   : > { %568 = vst.msk [vmem:[#allocation2 + $0x141] sm:$0xff] %vm542_vm1, %v534_v59  ;;  %v1441_v33 = vadd.f32 %v1974_v27, %v1344_v4  ;;  %v1152_v34 = vadd.f32 %v1120_v10, %v1055_v22  ;;  %v669_v16 = vadd.f32 %v1891_v12, %v637_v26  ;;  %v734_v39 = vmul.f32 %v1960_v17, %v1878_v7  ;;  %v1283_v27 = vld [vmem:[#allocation2 + $0x61] sm:$0xff]  ;;  %v1381_v19 = vld [vmem:[#allocation2 + $0x6a] sm:$0xff] }
  0x4f   : > { %569 = vst.msk [vmem:[#allocation2 + $0x151] sm:$0xff] %vm542_vm1, %v535_v3  ;;  %v1442_v43 = vadd.f32 %v1410_v41, %v1345_v15  ;;  %v959_v44 = vadd.f32 %v927_v31, %v862_v30  ;;  %v1024_v45 = vmul.f32 %v1988_v37, %v1920_v38  ;;  %v1121_v46 = vmul.f32 %v1994_v42, %v1928_v47  ;;  %v1188_v30 = vld [vmem:[#allocation2 + $0x78] sm:$0xff] }
  0x50   : > { %570 = vst.msk [vmem:[#allocation2 + $0x159] sm:$0xff] %vm542_vm1, %v536_v14  ;;  %v1250_v17 = vadd.f32 %v1218_v24, %v1152_v34  ;;  %v766_v48 = vadd.f32 %v734_v39, %v669_v16  ;;  %v831_v41 = vmul.f32 %v1967_v23, %v1893_v13  ;;  %v638_v49 = vmul.f32 %v1986_v36, %v1876_v6  ;;  %v1285_v31 = vld [vmem:[#allocation2 + $0x79] sm:$0xff] }
  0x51   : > { %571 = vst.msk [vmem:[#allocation2 + $0x169] sm:$0xff] %vm542_vm1, %v537_v21  ;;  %v1443_v50 = vadd.f32 %v1411_v57, %v1346_v29  ;;  %v1056_v53 = vadd.f32 %v1024_v45, %v959_v44  ;;  %v1219_v54 = vmul.f32 %v1932_v51, %v2050_v35  ;;  %v928_v55 = vmul.f32 %v2014_v61, %v1900_v20  ;;  %v1382_v44 = vld [vmem:[#allocation2 + $0x7a] sm:$0xff] }
  0x52   : > { %572 = vst.msk [vmem:[#allocation2 + $0x171] sm:$0xff] %vm542_vm1, %v538_v28  ;;  %v1347_v56 = vadd.f32 %v1315_v25, %v1250_v17  ;;  %v863_v23 = vadd.f32 %v831_v41, %v766_v48  ;;  %v670_v59 = vadd.f32 %v1891_v12, %v638_v49  ;;  %v735_v36 = vmul.f32 %v1988_v37, %v1878_v7 }
  0x53   : > { %573 = vst.msk [vmem:[#allocation2 + $0x181] sm:$0xff] %vm542_vm1, %v539_v32  ;;  %v1153_v60 = vadd.f32 %v1121_v46, %v1056_v53  ;;  %v1316_v57 = vmul.f32 %v1934_v52, %v1283_v27  ;;  %v1025_v1 = vmul.f32 %v2016_v0, %v1920_v38  ;;  %v832_v2 = vmul.f32 %v1994_v42, %v1893_v13 }
  0x54   : > { %574 = vst.msk [vmem:[#allocation2 + $0x189] sm:$0xff] %vm542_vm1, %v540_v40  ;;  %v1444_v3 = vadd.f32 %v1412_v5, %v1347_v56  ;;  %v960_v4 = vadd.f32 %v928_v55, %v863_v23  ;;  %v767_v10 = vadd.f32 %v735_v36, %v670_v59  ;;  %v639_v37 = vmul.f32 %v2014_v61, %v1876_v6  ;;  %v1189_v55 = vld [vmem:[#allocation2 + $0x80] sm:$0xff] }
  0x55   : > { %1473 = vst.msk [vmem:[%s2067_s9] sm:$0xff] %vm542_vm1, %v1441_v33  ;;  %v1251_v14 = vadd.f32 %v1219_v54, %v1153_v60  ;;  %v1413_v15 = vmul.f32 %v1945_v63, %v1380_v58  ;;  %v1122_v18 = vmul.f32 %v2027_v11, %v1928_v47  ;;  %v929_v42 = vmul.f32 %v2050_v35, %v1900_v20  ;;  %v1286_v56 = vld [vmem:[#allocation2 + $0x81] sm:$0xff] }
  0x56   : > { %1474 = vst.msk [vmem:[%s2067_s9 + $0x8] sm:$0xff] %vm542_vm1, %v1442_v43  ;;  %v1057_v62 = vadd.f32 %v1025_v1, %v960_v4  ;;  %v864_v21 = vadd.f32 %v832_v2, %v767_v10  ;;  %v671_v22 = vadd.f32 %v1891_v12, %v639_v37  ;;  %v736_v61 = vmul.f32 %v2016_v0, %v1878_v7  ;;  %v1383_v2 = vld [vmem:[#allocation2 + $0x82] sm:$0xff] }
  0x57   : > { %1475 = vst.msk [vmem:[%s2067_s9 + $0x10] sm:$0xff] %vm542_vm1, %v1443_v50  ;;  %v1348_v24 = vadd.f32 %v1316_v57, %v1251_v14  ;;  %v1220_v25 = vmul.f32 %v1932_v51, %v1187_v8  ;;  %v1317_v26 = vmul.f32 %v1934_v52, %v1284_v9  ;;  %v1026_v28 = vmul.f32 %v1283_v27, %v1920_v38 }
  0x58   : > { %1476 = vst.msk [vmem:[%s2067_s9 + $0x18] sm:$0xff] %vm542_vm1, %v1444_v3  ;;  %v1154_v29 = vadd.f32 %v1122_v18, %v1057_v62  ;;  %v961_v5 = vadd.f32 %v929_v42, %v864_v21  ;;  %v768_v32 = vadd.f32 %v736_v61, %v671_v22  ;;  %v833_v33 = vmul.f32 %v2027_v11, %v1893_v13  ;;  %v1190_v62 = vld [vmem:[#allocation2 + $0x90] sm:$0xff] }
  0x59   : > { %v1445_v34 = vadd.f32 %v1413_v15, %v1348_v24  ;;  %v1414_v16 = vmul.f32 %v1945_v63, %v1381_v19  ;;  %v1123_v0 = vmul.f32 %v1380_v58, %v1928_v47  ;;  %v640_v39 = vmul.f32 %v2050_v35, %v1876_v6 }
  0x5a   : > { %v1252_v40 = vadd.f32 %v1220_v25, %v1154_v29  ;;  %v1058_v43 = vadd.f32 %v1026_v28, %v961_v5  ;;  %v865_v45 = vadd.f32 %v833_v33, %v768_v32  ;;  %v930_v46 = vmul.f32 %v1187_v8, %v1900_v20  ;;  %v1287_v25 = vld [vmem:[#allocation2 + $0x91] sm:$0xff] }
  0x5b   : > { %1477 = vst.msk [vmem:[%s2067_s9 + $0x20] sm:$0xff] %vm542_vm1, %v1445_v34  ;;  %v1221_v17 = vmul.f32 %v1932_v51, %v1188_v30  ;;  %v1318_v11 = vmul.f32 %v1934_v52, %v1285_v31  ;;  %v672_v48 = vadd.f32 %v1891_v12, %v640_v39  ;;  %v737_v41 = vmul.f32 %v1283_v27, %v1878_v7 }
  0x5c   : > { %v1349_v49 = vadd.f32 %v1317_v26, %v1252_v40  ;;  %v1155_v50 = vadd.f32 %v1123_v0, %v1058_v43  ;;  %v962_v53 = vadd.f32 %v930_v46, %v865_v45  ;;  %v1027_v35 = vmul.f32 %v1284_v9, %v1920_v38  ;;  %v1191_v46 = vld [vmem:[#allocation2 + $0x98] sm:$0xff] }
  0x5d   : > { %v1415_v54 = vmul.f32 %v1945_v63, %v1382_v44  ;;  %v769_v23 = vadd.f32 %v737_v41, %v672_v48  ;;  %v834_v59 = vmul.f32 %v1380_v58, %v1893_v13  ;;  %v641_v36 = vmul.f32 %v1187_v8, %v1876_v6 }
  0x5e   : > { %v1446_v60 = vadd.f32 %v1414_v16, %v1349_v49  ;;  %v1253_v57 = vadd.f32 %v1221_v17, %v1155_v50  ;;  %v1059_v1 = vadd.f32 %v1027_v35, %v962_v53  ;;  %v1124_v27 = vmul.f32 %v1381_v19, %v1928_v47  ;;  %v1384_v16 = vld [vmem:[#allocation2 + $0x92] sm:$0xff]  ;;  %v1385_v35 = vld [vmem:[#allocation2 + $0x9a] sm:$0xff] }
  0x5f   : > { %v866_v3 = vadd.f32 %v834_v59, %v769_v23  ;;  %v931_v4 = vmul.f32 %v1188_v30, %v1900_v20  ;;  %v673_v10 = vadd.f32 %v1891_v12, %v641_v36  ;;  %v738_v37 = vmul.f32 %v1284_v9, %v1878_v7  ;;  %v1288_v17 = vld [vmem:[#allocation2 + $0x99] sm:$0xff] }
  0x60   : > { %1478 = vst.msk [vmem:[%s2067_s9 + $0x28] sm:$0xff] %vm542_vm1, %v1446_v60  ;;  %v1350_v14 = vadd.f32 %v1318_v11, %v1253_v57  ;;  %v1156_v15 = vadd.f32 %v1124_v27, %v1059_v1  ;;  %v1222_v58 = vmul.f32 %v1932_v51, %v1189_v55  ;;  %v1319_v8 = vmul.f32 %v1934_v52, %v1286_v56 }
  0x61   : > { %v963_v18 = vadd.f32 %v931_v4, %v866_v3  ;;  %v1028_v42 = vmul.f32 %v1285_v31, %v1920_v38  ;;  %v770_v21 = vadd.f32 %v738_v37, %v673_v10  ;;  %v835_v22 = vmul.f32 %v1381_v19, %v1893_v13  ;;  %v1192_v3 = vld [vmem:[#allocation2 + $0xa8] sm:$0xff] }
  0x62   : > { %v1447_v61 = vadd.f32 %v1415_v54, %v1350_v14  ;;  %v1254_v24 = vadd.f32 %v1222_v58, %v1156_v15  ;;  %v1416_v9 = vmul.f32 %v1945_v63, %v1383_v2  ;;  %v642_v26 = vmul.f32 %v1188_v30, %v1876_v6  ;;  %v1289_v58 = vld [vmem:[#allocation2 + $0xa9] sm:$0xff] }
  0x63   : > { %v1060_v28 = vadd.f32 %v1028_v42, %v963_v18  ;;  %v1125_v29 = vmul.f32 %v1382_v44, %v1928_v47  ;;  %v867_v5 = vadd.f32 %v835_v22, %v770_v21  ;;  %v932_v32 = vmul.f32 %v1189_v55, %v1900_v20 }
  0x64   : > { %1479 = vst.msk [vmem:[%s2067_s9 + $0x30] sm:$0xff] %vm542_vm1, %v1447_v61  ;;  %v1351_v33 = vadd.f32 %v1319_v8, %v1254_v24  ;;  %v1223_v34 = vmul.f32 %v1932_v51, %v1190_v62  ;;  %v674_v19 = vadd.f32 %v1891_v12, %v642_v26  ;;  %v739_v0 = vmul.f32 %v1285_v31, %v1878_v7  ;;  %v1386_v24 = vld [vmem:[#allocation2 + $0xaa] sm:$0xff] }
  0x65   : > { %v1157_v39 = vadd.f32 %v1125_v29, %v1060_v28  ;;  %v1320_v30 = vmul.f32 %v1934_v52, %v1287_v25  ;;  %v964_v40 = vadd.f32 %v932_v32, %v867_v5  ;;  %v1029_v43 = vmul.f32 %v1286_v56, %v1920_v38  ;;  %v1193_v32 = vld [vmem:[#allocation2 + $0xb0] sm:$0xff] }
  0x66   : > { %v1448_v45 = vadd.f32 %v1416_v9, %v1351_v33  ;;  %v771_v11 = vadd.f32 %v739_v0, %v674_v19  ;;  %v836_v48 = vmul.f32 %v1382_v44, %v1893_v13  ;;  %v643_v41 = vmul.f32 %v1189_v55, %v1876_v6  ;;  %v1290_v33 = vld [vmem:[#allocation2 + $0xb1] sm:$0xff] }
  0x67   : > { %v1255_v49 = vadd.f32 %v1223_v34, %v1157_v39  ;;  %v1417_v50 = vmul.f32 %v1945_v63, %v1384_v16  ;;  %v1061_v53 = vadd.f32 %v1029_v43, %v964_v40  ;;  %v1126_v31 = vmul.f32 %v1383_v2, %v1928_v47  ;;  %v1387_v43 = vld [vmem:[#allocation2 + $0xb2] sm:$0xff] }
  0x68   : > { %1480 = vst.msk [vmem:[%s2067_s9 + $0x38] sm:$0xff] %vm542_vm1, %v1448_v45  ;;  %v868_v54 = vadd.f32 %v836_v48, %v771_v11  ;;  %v933_v23 = vmul.f32 %v1190_v62, %v1900_v20  ;;  %v675_v59 = vadd.f32 %v1891_v12, %v643_v41  ;;  %v740_v36 = vmul.f32 %v1286_v56, %v1878_v7 }
  0x69   : > { %v1352_v60 = vadd.f32 %v1320_v30, %v1255_v49  ;;  %v1158_v44 = vadd.f32 %v1126_v31, %v1061_v53  ;;  %v1224_v55 = vmul.f32 %v1932_v51, %v1191_v46  ;;  %v1321_v57 = vmul.f32 %v1934_v52, %v1288_v17 }
  0x6a   : > { %v965_v1 = vadd.f32 %v933_v23, %v868_v54  ;;  %v1030_v27 = vmul.f32 %v1287_v25, %v1920_v38  ;;  %v772_v4 = vadd.f32 %v740_v36, %v675_v59  ;;  %v837_v10 = vmul.f32 %v1383_v2, %v1893_v13  ;;  %v1194_v54 = vld [vmem:[#allocation2 + $0xc0] sm:$0xff] }
  0x6b   : > { %v1449_v37 = vadd.f32 %v1417_v50, %v1352_v60  ;;  %v1256_v14 = vadd.f32 %v1224_v55, %v1158_v44  ;;  %v1418_v15 = vmul.f32 %v1945_v63, %v1385_v35  ;;  %v644_v56 = vmul.f32 %v1190_v62, %v1876_v6  ;;  %v1291_v55 = vld [vmem:[#allocation2 + $0xc1] sm:$0xff] }
  0x6c   : > { %v1062_v8 = vadd.f32 %v1030_v27, %v965_v1  ;;  %v1127_v18 = vmul.f32 %v1384_v16, %v1928_v47  ;;  %v869_v42 = vadd.f32 %v837_v10, %v772_v4  ;;  %v934_v21 = vmul.f32 %v1191_v46, %v1900_v20 }
  0x6d   : > { %1481 = vst.msk [vmem:[%s2067_s9 + $0x40] sm:$0xff] %vm542_vm1, %v1449_v37  ;;  %v1353_v22 = vadd.f32 %v1321_v57, %v1256_v14  ;;  %v1225_v61 = vmul.f32 %v1932_v51, %v1192_v3  ;;  %v676_v2 = vadd.f32 %v1891_v12, %v644_v56  ;;  %v741_v9 = vmul.f32 %v1287_v25, %v1878_v7  ;;  %v1388_v14 = vld [vmem:[#allocation2 + $0xc2] sm:$0xff] }
  0x6e   : > { %v1159_v26 = vadd.f32 %v1127_v18, %v1062_v8  ;;  %v1322_v62 = vmul.f32 %v1934_v52, %v1289_v58  ;;  %v966_v28 = vadd.f32 %v934_v21, %v869_v42  ;;  %v1031_v29 = vmul.f32 %v1288_v17, %v1920_v38  ;;  %v1195_v21 = vld [vmem:[#allocation2 + $0xc8] sm:$0xff] }
  0x6f   : > { %v1450_v5 = vadd.f32 %v1418_v15, %v1353_v22  ;;  %v773_v34 = vadd.f32 %v741_v9, %v676_v2  ;;  %v838_v19 = vmul.f32 %v1384_v16, %v1893_v13  ;;  %v645_v0 = vmul.f32 %v1191_v46, %v1876_v6  ;;  %v1292_v22 = vld [vmem:[#allocation2 + $0xc9] sm:$0xff] }
  0x70   : > { %v1257_v39 = vadd.f32 %v1225_v61, %v1159_v26  ;;  %v1419_v30 = vmul.f32 %v1945_v63, %v1386_v24  ;;  %v1063_v40 = vadd.f32 %v1031_v29, %v966_v28  ;;  %v1128_v25 = vmul.f32 %v1385_v35, %v1928_v47  ;;  %v1389_v29 = vld [vmem:[#allocation2 + $0xca] sm:$0xff] }
  0x71   : > { %1482 = vst.msk [vmem:[%s2067_s9 + $0x48] sm:$0xff] %vm542_vm1, %v1450_v5  ;;  %v870_v45 = vadd.f32 %v838_v19, %v773_v34  ;;  %v935_v11 = vmul.f32 %v1192_v3, %v1900_v20  ;;  %v677_v48 = vadd.f32 %v1891_v12, %v645_v0  ;;  %v742_v41 = vmul.f32 %v1288_v17, %v1878_v7 }
  0x72   : > { %v1354_v49 = vadd.f32 %v1322_v62, %v1257_v39  ;;  %v1160_v16 = vadd.f32 %v1128_v25, %v1063_v40  ;;  %v1226_v46 = vmul.f32 %v1932_v51, %v1193_v32  ;;  %v1323_v50 = vmul.f32 %v1934_v52, %v1290_v33 }
  0x73   : > { %v967_v53 = vadd.f32 %v935_v11, %v870_v45  ;;  %v1032_v31 = vmul.f32 %v1289_v58, %v1920_v38  ;;  %v774_v23 = vadd.f32 %v742_v41, %v677_v48  ;;  %v839_v59 = vmul.f32 %v1385_v35, %v1893_v13  ;;  %v1196_v45 = vld [vmem:[#allocation2 + $0xd8] sm:$0xff] }
  0x74   : > { %v1451_v36 = vadd.f32 %v1419_v30, %v1354_v49  ;;  %v1258_v60 = vadd.f32 %v1226_v46, %v1160_v16  ;;  %v1420_v44 = vmul.f32 %v1945_v63, %v1387_v43  ;;  %v646_v17 = vmul.f32 %v1192_v3, %v1876_v6  ;;  %v1293_v46 = vld [vmem:[#allocation2 + $0xd9] sm:$0xff] }
  0x75   : > { %v1064_v57 = vadd.f32 %v1032_v31, %v967_v53  ;;  %v1129_v1 = vmul.f32 %v1386_v24, %v1928_v47  ;;  %v871_v27 = vadd.f32 %v839_v59, %v774_v23  ;;  %v936_v4 = vmul.f32 %v1193_v32, %v1900_v20 }
  0x76   : > { %1483 = vst.msk [vmem:[%s2067_s9 + $0x50] sm:$0xff] %vm542_vm1, %v1451_v36  ;;  %v1355_v10 = vadd.f32 %v1323_v50, %v1258_v60  ;;  %v1227_v37 = vmul.f32 %v1932_v51, %v1194_v54  ;;  %v678_v35 = vadd.f32 %v1891_v12, %v646_v17  ;;  %v743_v15 = vmul.f32 %v1289_v58, %v1878_v7  ;;  %v1390_v60 = vld [vmem:[#allocation2 + $0xda] sm:$0xff] }
  0x77   : > { %v1161_v56 = vadd.f32 %v1129_v1, %v1064_v57  ;;  %v1324_v3 = vmul.f32 %v1934_v52, %v1291_v55  ;;  %v968_v8 = vadd.f32 %v936_v4, %v871_v27  ;;  %v1033_v18 = vmul.f32 %v1290_v33, %v1920_v38  ;;  %v1197_v4 = vld [vmem:[#allocation2 + $0xe0] sm:$0xff] }
  0x78   : > { %v1452_v42 = vadd.f32 %v1420_v44, %v1355_v10  ;;  %v775_v61 = vadd.f32 %v743_v15, %v678_v35  ;;  %v840_v2 = vmul.f32 %v1386_v24, %v1893_v13  ;;  %v647_v9 = vmul.f32 %v1193_v32, %v1876_v6  ;;  %v1294_v10 = vld [vmem:[#allocation2 + $0xe1] sm:$0xff] }
  0x79   : > { %v1259_v26 = vadd.f32 %v1227_v37, %v1161_v56  ;;  %v1421_v62 = vmul.f32 %v1945_v63, %v1388_v14  ;;  %v1065_v28 = vadd.f32 %v1033_v18, %v968_v8  ;;  %v1130_v58 = vmul.f32 %v1387_v43, %v1928_v47  ;;  %v1391_v18 = vld [vmem:[#allocation2 + $0xe2] sm:$0xff] }
  0x7a   : > { %1484 = vst.msk [vmem:[%s2067_s9 + $0x58] sm:$0xff] %vm542_vm1, %v1452_v42  ;;  %v872_v5 = vadd.f32 %v840_v2, %v775_v61  ;;  %v937_v34 = vmul.f32 %v1194_v54, %v1900_v20  ;;  %v679_v19 = vadd.f32 %v1891_v12, %v647_v9  ;;  %v744_v0 = vmul.f32 %v1290_v33, %v1878_v7 }
  0x7b   : > { %v1356_v39 = vadd.f32 %v1324_v3, %v1259_v26  ;;  %v1162_v24 = vadd.f32 %v1130_v58, %v1065_v28  ;;  %v1228_v32 = vmul.f32 %v1932_v51, %v1195_v21  ;;  %v1325_v30 = vmul.f32 %v1934_v52, %v1292_v22 }
  0x7c   : > { %v969_v40 = vadd.f32 %v937_v34, %v872_v5  ;;  %v1034_v25 = vmul.f32 %v1291_v55, %v1920_v38  ;;  %v776_v11 = vadd.f32 %v744_v0, %v679_v19  ;;  %v841_v48 = vmul.f32 %v1387_v43, %v1893_v13  ;;  %v1198_v5 = vld [vmem:[#allocation2 + $0xf0] sm:$0xff] }
  0x7d   : > { %v1453_v41 = vadd.f32 %v1421_v62, %v1356_v39  ;;  %v1260_v49 = vadd.f32 %v1228_v32, %v1162_v24  ;;  %v1422_v16 = vmul.f32 %v1945_v63, %v1389_v29  ;;  %v648_v33 = vmul.f32 %v1194_v54, %v1876_v6  ;;  %v1295_v32 = vld [vmem:[#allocation2 + $0xf1] sm:$0xff] }
  0x7e   : > { %v1066_v50 = vadd.f32 %v1034_v25, %v969_v40  ;;  %v1131_v53 = vmul.f32 %v1388_v14, %v1928_v47  ;;  %v873_v31 = vadd.f32 %v841_v48, %v776_v11  ;;  %v938_v23 = vmul.f32 %v1195_v21, %v1900_v20 }
  0x7f   : > { %1485 = vst.msk [vmem:[%s2067_s9 + $0x60] sm:$0xff] %vm542_vm1, %v1453_v41  ;;  %v1357_v59 = vadd.f32 %v1325_v30, %v1260_v49  ;;  %v1229_v36 = vmul.f32 %v1932_v51, %v1196_v45  ;;  %v680_v43 = vadd.f32 %v1891_v12, %v648_v33  ;;  %v745_v44 = vmul.f32 %v1291_v55, %v1878_v7  ;;  %v1392_v49 = vld [vmem:[#allocation2 + $0xf2] sm:$0xff] }
  0x80   : > { %v1163_v17 = vadd.f32 %v1131_v53, %v1066_v50  ;;  %v1326_v54 = vmul.f32 %v1934_v52, %v1293_v46  ;;  %v970_v57 = vadd.f32 %v938_v23, %v873_v31  ;;  %v1035_v1 = vmul.f32 %v1292_v22, %v1920_v38  ;;  %v1199_v23 = vld [vmem:[#allocation2 + $0xf8] sm:$0xff] }
  0x81   : > { %v1454_v27 = vadd.f32 %v1422_v16, %v1357_v59  ;;  %v777_v37 = vadd.f32 %v745_v44, %v680_v43  ;;  %v842_v35 = vmul.f32 %v1388_v14, %v1893_v13  ;;  %v649_v15 = vmul.f32 %v1195_v21, %v1876_v6  ;;  %v1296_v59 = vld [vmem:[#allocation2 + $0xf9] sm:$0xff] }
  0x82   : > { %v1261_v56 = vadd.f32 %v1229_v36, %v1163_v17  ;;  %v1423_v3 = vmul.f32 %v1945_v63, %v1390_v60  ;;  %v1067_v8 = vadd.f32 %v1035_v1, %v970_v57  ;;  %v1132_v55 = vmul.f32 %v1389_v29, %v1928_v47  ;;  %v1393_v1 = vld [vmem:[#allocation2 + $0xfa] sm:$0xff] }
  0x83   : > { %1486 = vst.msk [vmem:[%s2067_s9 + $0x68] sm:$0xff] %vm542_vm1, %v1454_v27  ;;  %v874_v42 = vadd.f32 %v842_v35, %v777_v37  ;;  %v939_v61 = vmul.f32 %v1196_v45, %v1900_v20  ;;  %v681_v2 = vadd.f32 %v1891_v12, %v649_v15  ;;  %v746_v9 = vmul.f32 %v1292_v22, %v1878_v7 }
  0x84   : > { %v1358_v26 = vadd.f32 %v1326_v54, %v1261_v56  ;;  %v1164_v14 = vadd.f32 %v1132_v55, %v1067_v8  ;;  %v1230_v21 = vmul.f32 %v1932_v51, %v1197_v4  ;;  %v1327_v62 = vmul.f32 %v1934_v52, %v1294_v10 }
  0x85   : > { %v971_v28 = vadd.f32 %v939_v61, %v874_v42  ;;  %v1036_v58 = vmul.f32 %v1293_v46, %v1920_v38  ;;  %v778_v34 = vadd.f32 %v746_v9, %v681_v2  ;;  %v843_v19 = vmul.f32 %v1389_v29, %v1893_v13  ;;  %v1200_v42 = vld [vmem:[#allocation2 + $0x108] sm:$0xff] }
  0x86   : > { %v1455_v0 = vadd.f32 %v1423_v3, %v1358_v26  ;;  %v1262_v39 = vadd.f32 %v1230_v21, %v1164_v14  ;;  %v1424_v24 = vmul.f32 %v1945_v63, %v1391_v18  ;;  %v650_v22 = vmul.f32 %v1196_v45, %v1876_v6  ;;  %v1297_v21 = vld [vmem:[#allocation2 + $0x109] sm:$0xff] }
  0x87   : > { %v1068_v30 = vadd.f32 %v1036_v58, %v971_v28  ;;  %v1133_v40 = vmul.f32 %v1390_v60, %v1928_v47  ;;  %v875_v25 = vadd.f32 %v843_v19, %v778_v34  ;;  %v940_v11 = vmul.f32 %v1197_v4, %v1900_v20 }
  0x88   : > { %1487 = vst.msk [vmem:[%s2067_s9 + $0x70] sm:$0xff] %vm542_vm1, %v1455_v0  ;;  %v1359_v48 = vadd.f32 %v1327_v62, %v1262_v39  ;;  %v1231_v41 = vmul.f32 %v1932_v51, %v1198_v5  ;;  %v682_v29 = vadd.f32 %v1891_v12, %v650_v22  ;;  %v747_v16 = vmul.f32 %v1293_v46, %v1878_v7  ;;  %v1394_v39 = vld [vmem:[#allocation2 + $0x10a] sm:$0xff] }
  0x89   : > { %v1165_v33 = vadd.f32 %v1133_v40, %v1068_v30  ;;  %v1328_v45 = vmul.f32 %v1934_v52, %v1295_v32  ;;  %v972_v50 = vadd.f32 %v940_v11, %v875_v25  ;;  %v1037_v53 = vmul.f32 %v1294_v10, %v1920_v38  ;;  %v1201_v11 = vld [vmem:[#allocation2 + $0x110] sm:$0xff] }
  0x8a   : > { %v1456_v31 = vadd.f32 %v1424_v24, %v1359_v48  ;;  %v779_v36 = vadd.f32 %v747_v16, %v682_v29  ;;  %v844_v43 = vmul.f32 %v1390_v60, %v1893_v13  ;;  %v651_v44 = vmul.f32 %v1197_v4, %v1876_v6  ;;  %v1298_v48 = vld [vmem:[#allocation2 + $0x111] sm:$0xff] }
  0x8b   : > { %v1263_v17 = vadd.f32 %v1231_v41, %v1165_v33  ;;  %v1425_v54 = vmul.f32 %v1945_v63, %v1392_v49  ;;  %v1069_v57 = vadd.f32 %v1037_v53, %v972_v50  ;;  %v1134_v46 = vmul.f32 %v1391_v18, %v1928_v47  ;;  %v1395_v50 = vld [vmem:[#allocation2 + $0x112] sm:$0xff] }
  0x8c   : > { %1488 = vst.msk [vmem:[%s2067_s9 + $0x78] sm:$0xff] %vm542_vm1, %v1456_v31  ;;  %v876_v27 = vadd.f32 %v844_v43, %v779_v36  ;;  %v941_v37 = vmul.f32 %v1198_v5, %v1900_v20  ;;  %v683_v35 = vadd.f32 %v1891_v12, %v651_v44  ;;  %v748_v15 = vmul.f32 %v1294_v10, %v1878_v7  ;;  %v2276_v36 = vld [vmem:[%s2436_s4] ss:$0 sm:$0xff] }
  0x8d   : > { %v1360_v56 = vadd.f32 %v1328_v45, %v1263_v17  ;;  %v1166_v60 = vadd.f32 %v1134_v46, %v1069_v57  ;;  %v1232_v4 = vmul.f32 %v1932_v51, %v1199_v23  ;;  %v1329_v3 = vmul.f32 %v1934_v52, %v1296_v59 }
  0x8e   : > { %v973_v8 = vadd.f32 %v941_v37, %v876_v27  ;;  %v1038_v55 = vmul.f32 %v1295_v32, %v1920_v38  ;;  %v780_v61 = vadd.f32 %v748_v15, %v683_v35  ;;  %v845_v2 = vmul.f32 %v1391_v18, %v1893_v13  ;;  %v1202_v27 = vld [vmem:[#allocation2 + $0x120] sm:$0xff] }
  0x8f   : > { %v1457_v9 = vadd.f32 %v1425_v54, %v1360_v56  ;;  %v1264_v26 = vadd.f32 %v1232_v4, %v1166_v60  ;;  %v1426_v14 = vmul.f32 %v1945_v63, %v1393_v1  ;;  %v652_v10 = vmul.f32 %v1198_v5, %v1876_v6  ;;  %v1299_v4 = vld [vmem:[#allocation2 + $0x121] sm:$0xff] }
  0x90   : > { %v1070_v62 = vadd.f32 %v1038_v55, %v973_v8  ;;  %v1135_v28 = vmul.f32 %v1392_v49, %v1928_v47  ;;  %v877_v58 = vadd.f32 %v845_v2, %v780_v61  ;;  %v942_v34 = vmul.f32 %v1199_v23, %v1900_v20 }
  0x91   : > { %1489 = vst.msk [vmem:[%s2067_s9 + $0x80] sm:$0xff] %vm542_vm1, %v1457_v9  ;;  %v1361_v19 = vadd.f32 %v1329_v3, %v1264_v26  ;;  %v1233_v0 = vmul.f32 %v1932_v51, %v1200_v42  ;;  %v684_v18 = vadd.f32 %v1891_v12, %v652_v10  ;;  %v749_v24 = vmul.f32 %v1295_v32, %v1878_v7  ;;  %v1396_v26 = vld [vmem:[#allocation2 + $0x122] sm:$0xff] }
  0x92   : > { %v1167_v22 = vadd.f32 %v1135_v28, %v1070_v62  ;;  %v1330_v5 = vmul.f32 %v1934_v52, %v1297_v21  ;;  %v974_v30 = vadd.f32 %v942_v34, %v877_v58  ;;  %v1039_v40 = vmul.f32 %v1296_v59, %v1920_v38  ;;  %v1203_v34 = vld [vmem:[#allocation2 + $0x128] sm:$0xff] }
  0x93   : > { %v1458_v25 = vadd.f32 %v1426_v14, %v1361_v19  ;;  %v781_v41 = vadd.f32 %v749_v24, %v684_v18  ;;  %v846_v29 = vmul.f32 %v1392_v49, %v1893_v13  ;;  %v653_v16 = vmul.f32 %v1199_v23, %v1876_v6  ;;  %v1300_v19 = vld [vmem:[#allocation2 + $0x129] sm:$0xff] }
  0x94   : > { %v1265_v33 = vadd.f32 %v1233_v0, %v1167_v22  ;;  %v1427_v12 = vmul.f32 %v1945_v63, %v1394_v39  ;;  %v1071_v45 = vadd.f32 %v1039_v40, %v974_v30  ;;  %v1136_v32 = vmul.f32 %v1393_v1, %v1928_v47  ;;  %v1397_v40 = vld [vmem:[#allocation2 + $0x12a] sm:$0xff] }
  0x95   : > { %1490 = vst.msk [vmem:[%s2067_s9 + $0x88] sm:$0xff] %vm542_vm1, %v1458_v25  ;;  %v878_v53 = vadd.f32 %v846_v29, %v781_v41  ;;  %v943_v31 = vmul.f32 %v1200_v42, %v1900_v20  ;;  %v685_v49 = vadd.f32 %v2276_v36, %v653_v16  ;;  %v750_v23 = vmul.f32 %v1296_v59, %v1878_v7 }
  0x96   : > { %v1362_v43 = vadd.f32 %v1330_v5, %v1265_v33  ;;  %v1168_v44 = vadd.f32 %v1136_v32, %v1071_v45  ;;  %v1234_v17 = vmul.f32 %v1932_v51, %v1201_v11  ;;  %v1331_v54 = vmul.f32 %v1934_v52, %v1298_v48 }
  0x97   : > { %v975_v57 = vadd.f32 %v943_v31, %v878_v53  ;;  %v1040_v46 = vmul.f32 %v1297_v21, %v1920_v38  ;;  %v782_v37 = vadd.f32 %v750_v23, %v685_v49  ;;  %v847_v35 = vmul.f32 %v1393_v1, %v1893_v13  ;;  %v1204_v53 = vld [vmem:[#allocation2 + $0x138] sm:$0xff] }
  0x98   : > { %v1459_v15 = vadd.f32 %v1427_v12, %v1362_v43  ;;  %v1266_v56 = vadd.f32 %v1234_v17, %v1168_v44  ;;  %v1428_v60 = vmul.f32 %v1945_v63, %v1395_v50  ;;  %v654_v59 = vmul.f32 %v1200_v42, %v1876_v6  ;;  %v1301_v17 = vld [vmem:[#allocation2 + $0x139] sm:$0xff] }
  0x99   : > { %v1072_v3 = vadd.f32 %v1040_v46, %v975_v57  ;;  %v1137_v8 = vmul.f32 %v1394_v39, %v1928_v47  ;;  %v879_v55 = vadd.f32 %v847_v35, %v782_v37  ;;  %v944_v61 = vmul.f32 %v1201_v11, %v1900_v20 }
  0x9a   : > { %1491 = vst.msk [vmem:[%s2067_s9 + $0x90] sm:$0xff] %vm542_vm1, %v1459_v15  ;;  %v1363_v2 = vadd.f32 %v1331_v54, %v1266_v56  ;;  %v1235_v9 = vmul.f32 %v1932_v51, %v1202_v27  ;;  %v686_v1 = vadd.f32 %v2276_v36, %v654_v59  ;;  %v751_v14 = vmul.f32 %v1297_v21, %v1878_v7  ;;  %v1398_v56 = vld [vmem:[#allocation2 + $0x13a] sm:$0xff] }
  0x9b   : > { %v1169_v10 = vadd.f32 %v1137_v8, %v1072_v3  ;;  %v1332_v42 = vmul.f32 %v1934_v52, %v1299_v4  ;;  %v976_v62 = vadd.f32 %v944_v61, %v879_v55  ;;  %v1041_v28 = vmul.f32 %v1298_v48, %v1920_v38  ;;  %v1205_v61 = vld [vmem:[#allocation2 + $0x140] sm:$0xff] }
  0x9c   : > { %v1460_v58 = vadd.f32 %v1428_v60, %v1363_v2  ;;  %v783_v0 = vadd.f32 %v751_v14, %v686_v1  ;;  %v848_v18 = vmul.f32 %v1394_v39, %v1893_v13  ;;  %v655_v24 = vmul.f32 %v1201_v11, %v1876_v6  ;;  %v1302_v2 = vld [vmem:[#allocation2 + $0x141] sm:$0xff] }
  0x9d   : > { %v1267_v22 = vadd.f32 %v1235_v9, %v1169_v10  ;;  %v1429_v5 = vmul.f32 %v1945_v63, %v1396_v26  ;;  %v1073_v30 = vadd.f32 %v1041_v28, %v976_v62  ;;  %v1138_v21 = vmul.f32 %v1395_v50, %v1928_v47  ;;  %v1399_v28 = vld [vmem:[#allocation2 + $0x142] sm:$0xff] }
  0x9e   : > { %1492 = vst.msk [vmem:[%s2067_s9 + $0x98] sm:$0xff] %vm542_vm1, %v1460_v58  ;;  %v880_v25 = vadd.f32 %v848_v18, %v783_v0  ;;  %v945_v41 = vmul.f32 %v1202_v27, %v1900_v20  ;;  %v687_v29 = vadd.f32 %v2276_v36, %v655_v24  ;;  %v752_v16 = vmul.f32 %v1298_v48, %v1878_v7 }
  0x9f   : > { %v1364_v33 = vadd.f32 %v1332_v42, %v1267_v22  ;;  %v1170_v39 = vadd.f32 %v1138_v21, %v1073_v30  ;;  %v1236_v11 = vmul.f32 %v1932_v51, %v1203_v34  ;;  %v1333_v12 = vmul.f32 %v1934_v52, %v1300_v19 }
  0xa0   : > { %v977_v45 = vadd.f32 %v945_v41, %v880_v25  ;;  %v1042_v32 = vmul.f32 %v1299_v4, %v1920_v38  ;;  %v784_v31 = vadd.f32 %v752_v16, %v687_v29  ;;  %v849_v49 = vmul.f32 %v1395_v50, %v1893_v13  ;;  %v1206_v25 = vld [vmem:[#allocation2 + $0x150] sm:$0xff] }
  0xa1   : > { %v1461_v23 = vadd.f32 %v1429_v5, %v1364_v33  ;;  %v1268_v43 = vadd.f32 %v1236_v11, %v1170_v39  ;;  %v1430_v44 = vmul.f32 %v1945_v63, %v1397_v40  ;;  %v656_v48 = vmul.f32 %v1202_v27, %v1876_v6  ;;  %v1303_v11 = vld [vmem:[#allocation2 + $0x151] sm:$0xff] }
  0xa2   : > { %v1074_v54 = vadd.f32 %v1042_v32, %v977_v45  ;;  %v1139_v57 = vmul.f32 %v1396_v26, %v1928_v47  ;;  %v881_v46 = vadd.f32 %v849_v49, %v784_v31  ;;  %v946_v37 = vmul.f32 %v1203_v34, %v1900_v20 }
  0xa3   : > { %1493 = vst.msk [vmem:[%s2067_s9 + $0xa0] sm:$0xff] %vm542_vm1, %v1461_v23  ;;  %v1365_v35 = vadd.f32 %v1333_v12, %v1268_v43  ;;  %v1237_v15 = vmul.f32 %v1932_v51, %v1204_v53  ;;  %v688_v50 = vadd.f32 %v2276_v36, %v656_v48  ;;  %v753_v60 = vmul.f32 %v1299_v4, %v1878_v7  ;;  %v1400_v43 = vld [vmem:[#allocation2 + $0x152] sm:$0xff] }
  0xa4   : > { %v1171_v59 = vadd.f32 %v1139_v57, %v1074_v54  ;;  %v1334_v27 = vmul.f32 %v1934_v52, %v1301_v17  ;;  %v978_v3 = vadd.f32 %v946_v37, %v881_v46  ;;  %v1043_v8 = vmul.f32 %v1300_v19, %v1920_v38  ;;  %v1207_v37 = vld [vmem:[#allocation2 + $0x158] sm:$0xff] }
  0xa5   : > { %v1462_v55 = vadd.f32 %v1430_v44, %v1365_v35  ;;  %v785_v9 = vadd.f32 %v753_v60, %v688_v50  ;;  %v850_v1 = vmul.f32 %v1396_v26, %v1893_v13  ;;  %v657_v14 = vmul.f32 %v1203_v34, %v1876_v6  ;;  %v1304_v35 = vld [vmem:[#allocation2 + $0x159] sm:$0xff] }
  0xa6   : > { %v1269_v10 = vadd.f32 %v1237_v15, %v1171_v59  ;;  %v1431_v42 = vmul.f32 %v1945_v63, %v1398_v56  ;;  %v1075_v62 = vadd.f32 %v1043_v8, %v978_v3  ;;  %v1140_v4 = vmul.f32 %v1397_v40, %v1928_v47  ;;  %v1401_v8 = vld [vmem:[#allocation2 + $0x15a] sm:$0xff] }
  0xa7   : > { %1494 = vst.msk [vmem:[%s2067_s9 + $0xa8] sm:$0xff] %vm542_vm1, %v1462_v55  ;;  %v882_v58 = vadd.f32 %v850_v1, %v785_v9  ;;  %v947_v0 = vmul.f32 %v1204_v53, %v1900_v20  ;;  %v689_v18 = vadd.f32 %v2276_v36, %v657_v14  ;;  %v754_v24 = vmul.f32 %v1300_v19, %v1878_v7 }
  0xa8   : > { %v1366_v22 = vadd.f32 %v1334_v27, %v1269_v10  ;;  %v1172_v26 = vadd.f32 %v1140_v4, %v1075_v62  ;;  %v1238_v34 = vmul.f32 %v1932_v51, %v1205_v61  ;;  %v1335_v5 = vmul.f32 %v1934_v52, %v1302_v2 }
  0xa9   : > { %v979_v30 = vadd.f32 %v947_v0, %v882_v58  ;;  %v1044_v21 = vmul.f32 %v1301_v17, %v1920_v38  ;;  %v786_v41 = vadd.f32 %v754_v24, %v689_v18  ;;  %v851_v29 = vmul.f32 %v1397_v40, %v1893_v13  ;;  %v1208_v58 = vld [vmem:[#allocation2 + $0x168] sm:$0xff] }
  0xaa   : > { %v1463_v16 = vadd.f32 %v1431_v42, %v1366_v22  ;;  %v1270_v33 = vadd.f32 %v1238_v34, %v1172_v26  ;;  %v1432_v39 = vmul.f32 %v1945_v63, %v1399_v28  ;;  %v658_v19 = vmul.f32 %v1204_v53, %v1876_v6  ;;  %v1305_v34 = vld [vmem:[#allocation2 + $0x169] sm:$0xff] }
  0xab   : > { %v1076_v12 = vadd.f32 %v1044_v21, %v979_v30  ;;  %v1141_v45 = vmul.f32 %v1398_v56, %v1928_v47  ;;  %v883_v32 = vadd.f32 %v851_v29, %v786_v41  ;;  %v948_v31 = vmul.f32 %v1205_v61, %v1900_v20 }
  0xac   : > { %1495 = vst.msk [vmem:[%s2067_s9 + $0xb0] sm:$0xff] %vm542_vm1, %v1463_v16  ;;  %v1367_v49 = vadd.f32 %v1335_v5, %v1270_v33  ;;  %v1239_v23 = vmul.f32 %v1932_v51, %v1206_v25  ;;  %v690_v40 = vadd.f32 %v2276_v36, %v658_v19  ;;  %v755_v44 = vmul.f32 %v1301_v17, %v1878_v7  ;;  %v1402_v33 = vld [vmem:[#allocation2 + $0x16a] sm:$0xff] }
  0xad   : > { %v1173_v48 = vadd.f32 %v1141_v45, %v1076_v12  ;;  %v1336_v53 = vmul.f32 %v1934_v52, %v1303_v11  ;;  %v980_v54 = vadd.f32 %v948_v31, %v883_v32  ;;  %v1045_v57 = vmul.f32 %v1302_v2, %v1920_v38  ;;  %v1209_v31 = vld [vmem:[#allocation2 + $0x170] sm:$0xff] }
  0xae   : > { %v1464_v46 = vadd.f32 %v1432_v39, %v1367_v49  ;;  %v787_v15 = vadd.f32 %v755_v44, %v690_v40  ;;  %v852_v50 = vmul.f32 %v1398_v56, %v1893_v13  ;;  %v659_v60 = vmul.f32 %v1205_v61, %v1876_v6  ;;  %v1306_v49 = vld [vmem:[#allocation2 + $0x171] sm:$0xff] }
  0xaf   : > { %v1271_v59 = vadd.f32 %v1239_v23, %v1173_v48  ;;  %v1433_v27 = vmul.f32 %v1945_v63, %v1400_v43  ;;  %v1077_v3 = vadd.f32 %v1045_v57, %v980_v54  ;;  %v1142_v17 = vmul.f32 %v1399_v28, %v1928_v47  ;;  %v1403_v57 = vld [vmem:[#allocation2 + $0x172] sm:$0xff] }
  0xb0   : > { %1496 = vst.msk [vmem:[%s2067_s9 + $0xb8] sm:$0xff] %vm542_vm1, %v1464_v46  ;;  %v884_v55 = vadd.f32 %v852_v50, %v787_v15  ;;  %v949_v9 = vmul.f32 %v1206_v25, %v1900_v20  ;;  %v691_v1 = vadd.f32 %v2276_v36, %v659_v60  ;;  %v756_v14 = vmul.f32 %v1302_v2, %v1878_v7 }
  0xb1   : > { %v1368_v10 = vadd.f32 %v1336_v53, %v1271_v59  ;;  %v1174_v56 = vadd.f32 %v1142_v17, %v1077_v3  ;;  %v1240_v61 = vmul.f32 %v1932_v51, %v1207_v37  ;;  %v1337_v42 = vmul.f32 %v1934_v52, %v1304_v35 }
  0xb2   : > { %v981_v62 = vadd.f32 %v949_v9, %v884_v55  ;;  %v1046_v4 = vmul.f32 %v1303_v11, %v1920_v38  ;;  %v788_v0 = vadd.f32 %v756_v14, %v691_v1  ;;  %v853_v18 = vmul.f32 %v1399_v28, %v1893_v13  ;;  %v1210_v55 = vld [vmem:[#allocation2 + $0x180] sm:$0xff] }
  0xb3   : > { %v1465_v24 = vadd.f32 %v1433_v27, %v1368_v10  ;;  %v1272_v22 = vadd.f32 %v1240_v61, %v1174_v56  ;;  %v1434_v26 = vmul.f32 %v1945_v63, %v1401_v8  ;;  %v660_v2 = vmul.f32 %v1206_v25, %v1876_v6 }
  0xb4   : > { %v1078_v5 = vadd.f32 %v1046_v4, %v981_v62  ;;  %v1143_v30 = vmul.f32 %v1400_v43, %v1928_v47  ;;  %v885_v21 = vadd.f32 %v853_v18, %v788_v0  ;;  %v950_v41 = vmul.f32 %v1207_v37, %v1900_v20 }
  0xb5   : > { %1497 = vst.msk [vmem:[%s2067_s9 + $0xc0] sm:$0xff] %vm542_vm1, %v1465_v24  ;;  %v1369_v29 = vadd.f32 %v1337_v42, %v1272_v22  ;;  %v1241_v16 = vmul.f32 %v1932_v51, %v1208_v58  ;;  %v692_v28 = vadd.f32 %v2276_v36, %v660_v2  ;;  %v757_v39 = vmul.f32 %v1303_v11, %v1878_v7  ;;  %v1307_v24 = vld [vmem:[#allocation2 + $0x181] sm:$0xff] }
  0xb6   : > { %v1175_v19 = vadd.f32 %v1143_v30, %v1078_v5  ;;  %v1338_v25 = vmul.f32 %v1934_v52, %v1305_v34  ;;  %v982_v12 = vadd.f32 %v950_v41, %v885_v21  ;;  %v1047_v45 = vmul.f32 %v1304_v35, %v1920_v38  ;;  %v1404_v2 = vld [vmem:[#allocation2 + $0x182] sm:$0xff] }
  0xb7   : > { %v1466_v32 = vadd.f32 %v1434_v26, %v1369_v29  ;;  %v789_v23 = vadd.f32 %v757_v39, %v692_v28  ;;  %v854_v40 = vmul.f32 %v1400_v43, %v1893_v13  ;;  %v661_v44 = vmul.f32 %v1207_v37, %v1876_v6  ;;  %v1211_v41 = vld [vmem:[#allocation2 + $0x188] sm:$0xff] }
  0xb8   : > { %v1273_v48 = vadd.f32 %v1241_v16, %v1175_v19  ;;  %v1435_v53 = vmul.f32 %v1945_v63, %v1402_v33  ;;  %v1079_v54 = vadd.f32 %v1047_v45, %v982_v12  ;;  %v1144_v11 = vmul.f32 %v1401_v8, %v1928_v47  ;;  %v1308_v45 = vld [vmem:[#allocation2 + $0x189] sm:$0xff] }
  0xb9   : > { %1498 = vst.msk [vmem:[%s2067_s9 + $0xc8] sm:$0xff] %vm542_vm1, %v1466_v32  ;;  %v886_v46 = vadd.f32 %v854_v40, %v789_v23  ;;  %v951_v15 = vmul.f32 %v1208_v58, %v1900_v20  ;;  %v693_v50 = vadd.f32 %v2276_v36, %v661_v44  ;;  %v758_v60 = vmul.f32 %v1304_v35, %v1878_v7 }
  0xba   : > { %v1370_v59 = vadd.f32 %v1338_v25, %v1273_v48  ;;  %v1176_v43 = vadd.f32 %v1144_v11, %v1079_v54  ;;  %v1242_v37 = vmul.f32 %v1932_v51, %v1209_v31  ;;  %v1339_v27 = vmul.f32 %v1934_v52, %v1306_v49  ;;  %v1212_v48 = vld [vmem:[#allocation2 + $0x198] sm:$0xff] }
  0xbb   : > { %v983_v3 = vadd.f32 %v951_v15, %v886_v46  ;;  %v1048_v17 = vmul.f32 %v1305_v34, %v1920_v38  ;;  %v790_v9 = vadd.f32 %v758_v60, %v693_v50  ;;  %v855_v1 = vmul.f32 %v1401_v8, %v1893_v13 }
  0xbc   : > { %v1467_v14 = vadd.f32 %v1435_v53, %v1370_v59  ;;  %v1274_v10 = vadd.f32 %v1242_v37, %v1176_v43  ;;  %v1436_v56 = vmul.f32 %v1945_v63, %v1403_v57  ;;  %v662_v35 = vmul.f32 %v1208_v58, %v1876_v6  ;;  %v1405_v53 = vld [vmem:[#allocation2 + $0x18a] sm:$0xff]  ;;  %v1309_v43 = vld [vmem:[#allocation2 + $0x199] sm:$0xff] }
  0xbd   : > { %v1080_v61 = vadd.f32 %v1048_v17, %v983_v3  ;;  %v1145_v42 = vmul.f32 %v1402_v33, %v1928_v47  ;;  %v887_v62 = vadd.f32 %v855_v1, %v790_v9  ;;  %v952_v4 = vmul.f32 %v1209_v31, %v1900_v20  ;;  %v1406_v1 = vld [vmem:[#allocation2 + $0x19a] sm:$0xff] }
  0xbe   : > { %1499 = vst.msk [vmem:[%s2067_s9 + $0xd0] sm:$0xff] %vm542_vm1, %v1467_v14  ;;  %v1371_v0 = vadd.f32 %v1339_v27, %v1274_v10  ;;  %v1243_v18 = vmul.f32 %v1932_v51, %v1210_v55  ;;  %v694_v8 = vadd.f32 %v2276_v36, %v662_v35  ;;  %v759_v22 = vmul.f32 %v1305_v34, %v1878_v7 }
  0xbf   : > { %v1177_v26 = vadd.f32 %v1145_v42, %v1080_v61  ;;  %v984_v58 = vadd.f32 %v952_v4, %v887_v62  ;;  %v1049_v5 = vmul.f32 %v1306_v49, %v1920_v38  ;;  %v856_v30 = vmul.f32 %v1402_v33, %v1893_v13  ;;  %v1310_v61 = vld [vmem:[#allocation2 + $0x1a1] sm:$0xff] }
  0xc0   : > { %v1468_v21 = vadd.f32 %v1436_v56, %v1371_v0  ;;  %v791_v29 = vadd.f32 %v759_v22, %v694_v8  ;;  %v953_v16 = vmul.f32 %v1210_v55, %v1900_v20  ;;  %v663_v28 = vmul.f32 %v1209_v31, %v1876_v6 }
  0xc1   : > { %v1275_v39 = vadd.f32 %v1243_v18, %v1177_v26  ;;  %v1340_v19 = vmul.f32 %v1934_v52, %v1307_v24  ;;  %v1081_v25 = vadd.f32 %v1049_v5, %v984_v58  ;;  %v1146_v34 = vmul.f32 %v1403_v57, %v1928_v47 }
  0xc2   : > { %1500 = vst.msk [vmem:[%s2067_s9 + $0xd8] sm:$0xff] %vm542_vm1, %v1468_v21  ;;  %v1437_v12 = vmul.f32 %v1945_v63, %v1404_v2  ;;  %v888_v32 = vadd.f32 %v856_v30, %v791_v29  ;;  %v695_v33 = vadd.f32 %v2276_v36, %v663_v28  ;;  %v760_v23 = vmul.f32 %v1306_v49, %v1878_v7 }
  0xc3   : > { %v1372_v40 = vadd.f32 %v1340_v19, %v1275_v39  ;;  %v1178_v44 = vadd.f32 %v1146_v34, %v1081_v25  ;;  %v1244_v6 = vmul.f32 %v1932_v51, %v1211_v41  ;;  %v1050_v31 = vmul.f32 %v1307_v24, %v1920_v38 }
  0xc4   : > { %v985_v54 = vadd.f32 %v953_v16, %v888_v32  ;;  %v792_v11 = vadd.f32 %v760_v23, %v695_v33  ;;  %v857_v46 = vmul.f32 %v1403_v57, %v1893_v13  ;;  %v954_v15 = vmul.f32 %v1211_v41, %v1900_v20  ;;  %v1213_v13 = vld [vmem:[#allocation2 + $0x1a0] sm:$0xff] }
  0xc5   : > { %v1469_v50 = vadd.f32 %v1437_v12, %v1372_v40  ;;  %v1276_v60 = vadd.f32 %v1244_v6, %v1178_v44  ;;  %v1341_v36 = vmul.f32 %v1934_v52, %v1308_v45  ;;  %v1147_v49 = vmul.f32 %v1404_v2, %v1928_v47 }
  0xc6   : > { %v1082_v7 = vadd.f32 %v1050_v31, %v985_v54  ;;  %v1245_v59 = vmul.f32 %v1932_v51, %v1212_v48  ;;  %v889_v37 = vadd.f32 %v857_v46, %v792_v11  ;;  %v1438_v3 = vmul.f32 %v1945_v63, %v1405_v53 }
  0xc7   : > { %1501 = vst.msk [vmem:[%s2067_s9 + $0xe0] sm:$0xff] %vm542_vm1, %v1469_v50  ;;  %v1373_v27 = vadd.f32 %v1341_v36, %v1276_v60  ;;  %v1051_v17 = vmul.f32 %v1308_v45, %v1920_v38  ;;  %v1342_v9 = vmul.f32 %v1934_v52, %v1309_v43  ;;  %v1148_v56 = vmul.f32 %v1405_v53, %v1928_v47  ;;  %v1407_v38 = vld [vmem:[#allocation2 + $0x1a2] sm:$0xff] }
  0xc8   : > { %v1179_v57 = vadd.f32 %v1147_v49, %v1082_v7  ;;  %v986_v20 = vadd.f32 %v954_v15, %v889_v37  ;;  %v1246_v35 = vmul.f32 %v1932_v51, %v1213_v13  ;;  %v1439_v62 = vmul.f32 %v1945_v63, %v1406_v1 }
  0xc9   : > { %v1470_v55 = vadd.f32 %v1438_v3, %v1373_v27  ;;  %v1343_v24 = vmul.f32 %v1934_v52, %v1310_v61  ;;  %v1440_v22 = vmul.f32 %v1945_v63, %v1407_v38 }
  0xca   : > { %v1277_v14 = vadd.f32 %v1245_v59, %v1179_v57  ;;  %v1083_v10 = vadd.f32 %v1051_v17, %v986_v20 }
  0xcb   : > { %1502 = vst.msk [vmem:[%s2067_s9 + $0xe8] sm:$0xff] %vm542_vm1, %v1470_v55 }
  0xcc   : > { %v1374_v42 = vadd.f32 %v1342_v9, %v1277_v14  ;;  %v1180_v4 = vadd.f32 %v1148_v56, %v1083_v10 }
  0xce   : > { %v1471_v0 = vadd.f32 %v1439_v62, %v1374_v42  ;;  %v1278_v18 = vadd.f32 %v1246_v35, %v1180_v4 }
  0xd0   : > { %1503 = vst.msk [vmem:[%s2067_s9 + $0xf0] sm:$0xff] %vm542_vm1, %v1471_v0  ;;  %v1375_v8 = vadd.f32 %v1343_v24, %v1278_v18 }
  0xd2   : > { %v1472_v47 = vadd.f32 %v1440_v22, %v1375_v8 }
  0xd4   : > { %1504 = vst.msk [vmem:[%s2067_s9 + $0xf8] sm:$0xff] %vm542_vm1, %v1472_v47 }
  0xd5 PF: > { %s15_s20 = sadd.s32 1, %s1763_s20   ;;  %s2438_s18 = smov %s1759_s19 }
  0xd6   : > { %p12_p5 = scmp.ge.s32.totalorder %s15_s20, 4   ;;  %s2439_s19 = smov %s2441_s1 }
  0xd8   :  { %14 = sbr.rel (!%p12_p5) target bundleno = 2 (0x2), region = 85 }

</bundles_post_ra>
